<compile_context>
chip_gen: v6e
topology: v6e:2x2x1
jax: 0.10.0
libtpu: 0.0.40
codegen_flags: <defaults>
</compile_context>

<pallas_src>
import jax
import jax.numpy as jnp
from jax.experimental import pallas as pl
from jax.experimental.pallas import tpu as pltpu

PATCH = 16          # nn.AvgPool2d(patch_size=16)
MEAN_VAL = 0.6      # L_exp mean_val
_PRECISION = jax.lax.Precision.HIGHEST


def lrpro_kernel(x_ref, m_ref, ph_ref, pw_ref, uh_ref, uw_ref, o_ref):
    # x_ref : (3, TH, W)    one row-tile of one batch element (VMEM)
    # m_ref : (2*B,)        SMEM global channel means [g0, b0, g1, b1, ...]
    # ph_ref: (TH/16, TH)   row pool, entries 1/16
    # pw_ref: (W, W/16)     column pool, entries 1/48 (1/3 channel mean folded in)
    # uh_ref: (TH, TH/16)   row nearest-upsample, entries 1
    # uw_ref: (W/16, W)     column nearest-upsample, entries 1
    # o_ref : (4, TH, W)
    bidx = pl.program_id(0)
    r = x_ref[0]
    g = x_ref[1]
    b = x_ref[2]

    # ---- L_color: per-pixel squared difference to the *global* channel means
    mg = m_ref[2 * bidx]
    mb = m_ref[2 * bidx + 1]
    o_ref[0] = (r - mg) ** 2
    o_ref[1] = (r - mb) ** 2
    o_ref[2] = (b - mg) ** 2

    # ---- L_exp: channel mean -> 16x16 avgpool -> nearest upsample -> (.-0.6)^2
    gray3 = r + g + b                                              # (TH, W)
    t1 = jnp.dot(gray3, pw_ref[...], precision=_PRECISION,
                 preferred_element_type=jnp.float32)               # (TH, Wp)
    pooled = jnp.dot(ph_ref[...], t1, precision=_PRECISION,
                     preferred_element_type=jnp.float32)           # (THp, Wp)
    t2 = jnp.dot(uh_ref[...], pooled, precision=_PRECISION,
                 preferred_element_type=jnp.float32)               # (TH, Wp)
    up = jnp.dot(t2, uw_ref[...], precision=_PRECISION,
                 preferred_element_type=jnp.float32)               # (TH, W)
    o_ref[3] = (up - jnp.float32(MEAN_VAL)) ** 2


def _pool_matrix(n, patch):
    """(n, n//patch) with 1/patch where row//patch == col (avg-pool down)."""
    rows = jnp.arange(n) // patch
    cols = jnp.arange(n // patch)
    return (rows[:, None] == cols[None, :]).astype(jnp.float32) / jnp.float32(patch)


def _vmem_capacity_bytes():
    try:
        return int(pltpu.get_tpu_info().vmem_capacity_bytes)
    except Exception:
        return 64 * 1024 * 1024         # conservative: assume v7x (64 MiB / TC)


def _footprint_bytes(th, W):
    """Approximate live VMEM for one grid step."""
    wp, thp = W // PATCH, th // PATCH
    blocks = 2 * (3 + 4) * th * W * 4                # double-buffered in + out blocks
    temps = 3 * th * W * 4                           # gray3 / up / diff temporaries
    consts = 2 * 4 * (2 * W * wp + 2 * th * thp)     # pw, uw, ph, uh (double-buffered)
    return blocks + temps + consts


def _choose_tile_h(B, H, W, budget_bytes):
    """Largest row tile (multiple of PATCH, dividing H) whose per-step VMEM
    footprint fits the budget.  For B == 1 keep >= 2 grid steps so both v7x
    TensorCores get work."""
    best = PATCH
    for th in range(PATCH, H + 1, PATCH):
        if H % th:
            continue
        if B == 1 and th == H and H > PATCH:
            continue                      # keep >= 2 parallel steps on dual-TC chips
        if _footprint_bytes(th, W) <= budget_bytes:
            best = th
    return best


def lrpro(x, *, tile_h=None):
    """x: (B, 3, H, W) float32, H and W multiples of PATCH.
    For best store bandwidth W should also be a multiple of 128 (lane-dense vst);
    other widths are correct but use masked stores."""
    B, C, H, W = x.shape
    assert C == 3, "LRPro expects 3-channel (RGB) input"
    assert H % PATCH == 0 and W % PATCH == 0

    phys = _vmem_capacity_bytes()
    vmem_limit = min(96 * 1024 * 1024, max(48 * 1024 * 1024, phys - 16 * 1024 * 1024))
    budget = (vmem_limit * 3) // 4        # leave headroom for Mosaic internals

    TH = tile_h if tile_h is not None else _choose_tile_h(B, H, W, budget)
    assert H % TH == 0 and TH % PATCH == 0
    Wp, THp = W // PATCH, TH // PATCH

    # Global per-image channel means (g, b): tiny reduction done by XLA so the
    # kernel can tile over rows without breaking L_color semantics.  Flattened
    # to 1-D so the SMEM copy is just a few words: [g0, b0, g1, b1, ...].
    means = jnp.mean(x[:, 1:3, :, :], axis=(2, 3)).reshape(-1)

    # Factored pooling constants (index_map constant across the grid -> DMA'd once).
    ph = _pool_matrix(TH, PATCH).T                         # (THp, TH), entries 1/16
    uh = _pool_matrix(TH, PATCH) * jnp.float32(PATCH)      # (TH, THp), ones
    pw = _pool_matrix(W, PATCH) * jnp.float32(1.0 / 3.0)   # (W, Wp), entries 1/48
    uw = _pool_matrix(W, PATCH).T * jnp.float32(PATCH)     # (Wp, W), ones

    grid = (B, H // TH)
    return pl.pallas_call(
        lrpro_kernel,
        out_shape=jax.ShapeDtypeStruct((B, 4, H, W), jnp.float32),
        grid=grid,
        in_specs=[
            pl.BlockSpec((None, 3, TH, W), lambda b, i: (b, 0, i, 0)),
            pl.BlockSpec(memory_space=pltpu.MemorySpace.SMEM),   # means, whole array
            pl.BlockSpec((THp, TH), lambda b, i: (0, 0)),
            pl.BlockSpec((W, Wp), lambda b, i: (0, 0)),
            pl.BlockSpec((TH, THp), lambda b, i: (0, 0)),
            pl.BlockSpec((Wp, W), lambda b, i: (0, 0)),
        ],
        out_specs=pl.BlockSpec((None, 4, TH, W), lambda b, i: (b, 0, i, 0)),
        compiler_params=pltpu.CompilerParams(
            dimension_semantics=("parallel", "parallel"),
            vmem_limit_bytes=vmem_limit),
    )(x, means, ph, pw, uh, uw)


def lrpro_reference(x):
    # pure-JAX reference mirroring the PyTorch module
    mean_rgb = jnp.mean(x, axis=(2, 3), keepdims=True)            # (B, 3, 1, 1)
    mg = mean_rgb[:, 1:2]
    mb = mean_rgb[:, 2:3]
    r = x[:, 0:1]
    b = x[:, 2:3]
    drg = (r - mg) ** 2
    drb = (r - mb) ** 2
    dgb = (b - mg) ** 2
    gray = jnp.mean(x, axis=1, keepdims=True)                     # (B, 1, H, W)
    B, _, H, W = x.shape
    pooled = gray.reshape(B, 1, H // PATCH, PATCH, W // PATCH, PATCH).mean(axis=(3, 5))
    up = jnp.repeat(jnp.repeat(pooled, PATCH, axis=2), PATCH, axis=3)
    d = (up - MEAN_VAL) ** 2
    return jnp.concatenate([drg, drb, dgb, d], axis=1)


if __name__ == "__main__":
    key = jax.random.PRNGKey(0)
    # Small but lane-dense shape (W = 128 keeps output stores full-width).
    B, C, H, W = 2, 3, 64, 128
    x = jax.random.uniform(key, (B, C, H, W), dtype=jnp.float32)

    ref = lrpro_reference(x)

    # 1) auto-tiled call (single row tile per image here)
    out = jax.block_until_ready(lrpro(x))
    assert out.shape == (B, 4, H, W)
    assert jnp.allclose(out, ref, rtol=1e-4, atol=1e-5), "mismatch vs reference (auto tile)"

    # 2) forced smaller row tile to exercise the multi-row-tile pipeline path
    out_tiled = jax.block_until_ready(lrpro(x, tile_h=32))
    assert jnp.allclose(out_tiled, ref, rtol=1e-4, atol=1e-5), "mismatch vs reference (tiled)"

    print("KERNEL_OK")
</pallas_src>

<mosaic_0001>
module attributes {stable_mosaic.version = 11 : i64} {
  func.func @lrpro_kernel(%arg0: i32, %arg1: i32, %arg2: memref<1x3x64x128xf32, #tpu.memory_space<vmem>>, %arg3: memref<4xf32, #tpu.memory_space<smem>>, %arg4: memref<4x64xf32, #tpu.memory_space<vmem>>, %arg5: memref<128x8xf32, #tpu.memory_space<vmem>>, %arg6: memref<64x4xf32, #tpu.memory_space<vmem>>, %arg7: memref<8x128xf32, #tpu.memory_space<vmem>>, %arg8: memref<1x4x64x128xf32, #tpu.memory_space<vmem>>) attributes {dimension_semantics = [#tpu.dimension_semantics<parallel>, #tpu.dimension_semantics<parallel>], iteration_bounds = array<i64: 2, 1>, scalar_prefetch = 0 : i64, scratch_operands = 0 : i64, tpu.core_type = #tpu.core_type<tc>, window_params = [{transform_indices = @transform_0, window_bounds = array<i64: 1, 3, 64, 128>}, {transform_indices = @transform_1, window_bounds = array<i64: 4>}, {pipeline_mode = #tpu.pipeline_mode<synchronous>, transform_indices = @transform_2, window_bounds = array<i64: 4, 64>}, {pipeline_mode = #tpu.pipeline_mode<synchronous>, transform_indices = @transform_3, window_bounds = array<i64: 128, 8>}, {pipeline_mode = #tpu.pipeline_mode<synchronous>, transform_indices = @transform_4, window_bounds = array<i64: 64, 4>}, {pipeline_mode = #tpu.pipeline_mode<synchronous>, transform_indices = @transform_5, window_bounds = array<i64: 8, 128>}, {transform_indices = @transform_6, window_bounds = array<i64: 1, 4, 64, 128>}]} {
    %c0 = arith.constant 0 : index
    %c0_0 = arith.constant 0 : index
    %c0_1 = arith.constant 0 : index
    %c0_2 = arith.constant 0 : index
    %0 = vector.load %arg2[%c0, %c0_0, %c0_1, %c0_2] : memref<1x3x64x128xf32, #tpu.memory_space<vmem>>, vector<1x1x64x128xf32>
    %1 = vector.shape_cast %0 : vector<1x1x64x128xf32> to vector<64x128xf32>
    %c0_3 = arith.constant 0 : index
    %c1 = arith.constant 1 : index
    %c0_4 = arith.constant 0 : index
    %c0_5 = arith.constant 0 : index
    %2 = vector.load %arg2[%c0_3, %c1, %c0_4, %c0_5] : memref<1x3x64x128xf32, #tpu.memory_space<vmem>>, vector<1x1x64x128xf32>
    %3 = vector.shape_cast %2 : vector<1x1x64x128xf32> to vector<64x128xf32>
    %c0_6 = arith.constant 0 : index
    %c2 = arith.constant 2 : index
    %c0_7 = arith.constant 0 : index
    %c0_8 = arith.constant 0 : index
    %4 = vector.load %arg2[%c0_6, %c2, %c0_7, %c0_8] : memref<1x3x64x128xf32, #tpu.memory_space<vmem>>, vector<1x1x64x128xf32>
    %5 = vector.shape_cast %4 : vector<1x1x64x128xf32> to vector<64x128xf32>
    %c2_i32 = arith.constant 2 : i32
    %6 = arith.muli %c2_i32, %arg0 : i32
    %7 = arith.index_cast %6 : i32 to index
    %8 = memref.load %arg3[%7] : memref<4xf32, #tpu.memory_space<smem>>
    %c2_i32_9 = arith.constant 2 : i32
    %9 = arith.muli %c2_i32_9, %arg0 : i32
    %c1_i32 = arith.constant 1 : i32
    %10 = arith.addi %9, %c1_i32 : i32
    %11 = arith.index_cast %10 : i32 to index
    %12 = memref.load %arg3[%11] : memref<4xf32, #tpu.memory_space<smem>>
    %13 = vector.broadcast %8 : f32 to vector<64x128xf32>
    %14 = arith.subf %1, %13 : vector<64x128xf32>
    %15 = arith.mulf %14, %14 : vector<64x128xf32>
    %c0_10 = arith.constant 0 : index
    %c0_11 = arith.constant 0 : index
    %c0_12 = arith.constant 0 : index
    %c0_13 = arith.constant 0 : index
    %16 = vector.load %arg8[%c0_10, %c0_11, %c0_12, %c0_13] : memref<1x4x64x128xf32, #tpu.memory_space<vmem>>, vector<1x1x64x128xf32>
    %17 = vector.shape_cast %16 : vector<1x1x64x128xf32> to vector<64x128xf32>
    %18 = vector.shape_cast %15 : vector<64x128xf32> to vector<1x1x64x128xf32>
    tpu.vector_store %arg8[%c0_10, %c0_11, %c0_12, %c0_13], %18 {strides = array<i32>} : memref<1x4x64x128xf32, #tpu.memory_space<vmem>>, vector<1x1x64x128xf32>,
    %19 = vector.broadcast %12 : f32 to vector<64x128xf32>
    %20 = arith.subf %1, %19 : vector<64x128xf32>
    %21 = arith.mulf %20, %20 : vector<64x128xf32>
    %c0_14 = arith.constant 0 : index
    %c1_15 = arith.constant 1 : index
    %c0_16 = arith.constant 0 : index
    %c0_17 = arith.constant 0 : index
    %22 = vector.load %arg8[%c0_14, %c1_15, %c0_16, %c0_17] : memref<1x4x64x128xf32, #tpu.memory_space<vmem>>, vector<1x1x64x128xf32>
    %23 = vector.shape_cast %22 : vector<1x1x64x128xf32> to vector<64x128xf32>
    %24 = vector.shape_cast %21 : vector<64x128xf32> to vector<1x1x64x128xf32>
    tpu.vector_store %arg8[%c0_14, %c1_15, %c0_16, %c0_17], %24 {strides = array<i32>} : memref<1x4x64x128xf32, #tpu.memory_space<vmem>>, vector<1x1x64x128xf32>,
    %25 = vector.broadcast %8 : f32 to vector<64x128xf32>
    %26 = arith.subf %5, %25 : vector<64x128xf32>
    %27 = arith.mulf %26, %26 : vector<64x128xf32>
    %c0_18 = arith.constant 0 : index
    %c2_19 = arith.constant 2 : index
    %c0_20 = arith.constant 0 : index
    %c0_21 = arith.constant 0 : index
    %28 = vector.load %arg8[%c0_18, %c2_19, %c0_20, %c0_21] : memref<1x4x64x128xf32, #tpu.memory_space<vmem>>, vector<1x1x64x128xf32>
    %29 = vector.shape_cast %28 : vector<1x1x64x128xf32> to vector<64x128xf32>
    %30 = vector.shape_cast %27 : vector<64x128xf32> to vector<1x1x64x128xf32>
    tpu.vector_store %arg8[%c0_18, %c2_19, %c0_20, %c0_21], %30 {strides = array<i32>} : memref<1x4x64x128xf32, #tpu.memory_space<vmem>>, vector<1x1x64x128xf32>,
    %31 = arith.addf %1, %3 : vector<64x128xf32>
    %32 = arith.addf %31, %5 : vector<64x128xf32>
    %c0_22 = arith.constant 0 : index
    %c0_23 = arith.constant 0 : index
    %33 = vector.load %arg5[%c0_22, %c0_23] : memref<128x8xf32, #tpu.memory_space<vmem>>, vector<128x8xf32>
    %cst = arith.constant dense<0.000000e+00> : vector<64x8xf32>
    %34 = tpu.matmul %32, %33, %cst {dimension_numbers = #tpu.dot_dimension_numbers<[1], [0], [0], [1], [0, 0, 1, 1], [], []>, precision = #tpu.contract_precision<fp32>} : vector<64x128xf32>, vector<128x8xf32>, vector<64x8xf32> -> vector<64x8xf32>
    %c0_24 = arith.constant 0 : index
    %c0_25 = arith.constant 0 : index
    %35 = vector.load %arg4[%c0_24, %c0_25] : memref<4x64xf32, #tpu.memory_space<vmem>>, vector<4x64xf32>
    %cst_26 = arith.constant dense<0.000000e+00> : vector<4x8xf32>
    %36 = tpu.matmul %35, %34, %cst_26 {dimension_numbers = #tpu.dot_dimension_numbers<[1], [0], [0], [1], [0, 0, 1, 1], [], []>, precision = #tpu.contract_precision<fp32>} : vector<4x64xf32>, vector<64x8xf32>, vector<4x8xf32> -> vector<4x8xf32>
    %c0_27 = arith.constant 0 : index
    %c0_28 = arith.constant 0 : index
    %37 = vector.load %arg6[%c0_27, %c0_28] : memref<64x4xf32, #tpu.memory_space<vmem>>, vector<64x4xf32>
    %cst_29 = arith.constant dense<0.000000e+00> : vector<64x8xf32>
    %38 = tpu.matmul %37, %36, %cst_29 {dimension_numbers = #tpu.dot_dimension_numbers<[1], [0], [0], [1], [0, 0, 1, 1], [], []>, precision = #tpu.contract_precision<fp32>} : vector<64x4xf32>, vector<4x8xf32>, vector<64x8xf32> -> vector<64x8xf32>
    %c0_30 = arith.constant 0 : index
    %c0_31 = arith.constant 0 : index
    %39 = vector.load %arg7[%c0_30, %c0_31] : memref<8x128xf32, #tpu.memory_space<vmem>>, vector<8x128xf32>
    %cst_32 = arith.constant dense<0.000000e+00> : vector<64x128xf32>
    %40 = tpu.matmul %38, %39, %cst_32 {dimension_numbers = #tpu.dot_dimension_numbers<[1], [0], [0], [1], [0, 0, 1, 1], [], []>, precision = #tpu.contract_precision<fp32>} : vector<64x8xf32>, vector<8x128xf32>, vector<64x128xf32> -> vector<64x128xf32>
    %cst_33 = arith.constant 6.000000e-01 : f32
    %41 = vector.broadcast %cst_33 : f32 to vector<64x128xf32>
    %42 = arith.subf %40, %41 : vector<64x128xf32>
    %43 = arith.mulf %42, %42 : vector<64x128xf32>
    %c0_34 = arith.constant 0 : index
    %c3 = arith.constant 3 : index
    %c0_35 = arith.constant 0 : index
    %c0_36 = arith.constant 0 : index
    %44 = vector.load %arg8[%c0_34, %c3, %c0_35, %c0_36] : memref<1x4x64x128xf32, #tpu.memory_space<vmem>>, vector<1x1x64x128xf32>
    %45 = vector.shape_cast %44 : vector<1x1x64x128xf32> to vector<64x128xf32>
    %46 = vector.shape_cast %43 : vector<64x128xf32> to vector<1x1x64x128xf32>
    tpu.vector_store %arg8[%c0_34, %c3, %c0_35, %c0_36], %46 {strides = array<i32>} : memref<1x4x64x128xf32, #tpu.memory_space<vmem>>, vector<1x1x64x128xf32>,
    return
  }
  func.func @transform_0(%arg0: i32, %arg1: i32) -> (i32, i32, i32, i32) {
    %c0_i32 = arith.constant 0 : i32
    %c0_i32_0 = arith.constant 0 : i32
    %c0_i32_1 = arith.constant 0 : i32
    return %arg0, %c0_i32, %arg1, %c0_i32_0 : i32, i32, i32, i32
  }
  func.func @transform_1(%arg0: i32, %arg1: i32) -> i32 {
    %c0_i32 = arith.constant 0 : i32
    %c0_i32_0 = arith.constant 0 : i32
    return %c0_i32 : i32
  }
  func.func @transform_2(%arg0: i32, %arg1: i32) -> (i32, i32) {
    %c0_i32 = arith.constant 0 : i32
    %c0_i32_0 = arith.constant 0 : i32
    %c0_i32_1 = arith.constant 0 : i32
    return %c0_i32, %c0_i32_0 : i32, i32
  }
  func.func @transform_3(%arg0: i32, %arg1: i32) -> (i32, i32) {
    %c0_i32 = arith.constant 0 : i32
    %c0_i32_0 = arith.constant 0 : i32
    %c0_i32_1 = arith.constant 0 : i32
    return %c0_i32, %c0_i32_0 : i32, i32
  }
  func.func @transform_4(%arg0: i32, %arg1: i32) -> (i32, i32) {
    %c0_i32 = arith.constant 0 : i32
    %c0_i32_0 = arith.constant 0 : i32
    %c0_i32_1 = arith.constant 0 : i32
    return %c0_i32, %c0_i32_0 : i32, i32
  }
  func.func @transform_5(%arg0: i32, %arg1: i32) -> (i32, i32) {
    %c0_i32 = arith.constant 0 : i32
    %c0_i32_0 = arith.constant 0 : i32
    %c0_i32_1 = arith.constant 0 : i32
    return %c0_i32, %c0_i32_0 : i32, i32
  }
  func.func @transform_6(%arg0: i32, %arg1: i32) -> (i32, i32, i32, i32) {
    %c0_i32 = arith.constant 0 : i32
    %c0_i32_0 = arith.constant 0 : i32
    %c0_i32_1 = arith.constant 0 : i32
    return %arg0, %c0_i32, %arg1, %c0_i32_0 : i32, i32, i32, i32
  }
}

</mosaic_0001>

<bundles_post_ra>
// kernel: tpu_custom_call.1
= control target key start
LH: loop header
LB: loop body
LE: loop exit
PB: predicated region body
PF: predicated region fallthrough
CT: control target
= control target key end

     0   :  { %s6011_s0 = inlined_call_operand.hbm [shape: f32[2,3,64,128], index: 0, kind: input, shape index: {}]   ;;  %s6012_s1 = inlined_call_operand.vmem [shape: f32[4], index: 1, kind: input, shape index: {}]   ;;  %s6013_s2 = inlined_call_operand.vmem [shape: f32[4,64], index: 2, kind: input, shape index: {}]   ;;  %s6014_s3 = inlined_call_operand.vmem [shape: f32[128,8], index: 3, kind: input, shape index: {}]   ;;  %s6015_s4 = inlined_call_operand.vmem [shape: f32[64,4], index: 4, kind: input, shape index: {}]   ;;  %s6016_s5 = inlined_call_operand.vmem [shape: f32[8,128], index: 5, kind: input, shape index: {}]   ;;  %s6017_s6 = inlined_call_operand.hbm [shape: f32[2,4,64,128], index: 6, kind: output, shape index: {}]  }
   0x1   :  { %6053 = sst [smem:[#allocation29_spill]] %s6012_s1 }
   0x2   :  { %11 = vsyncpa [#allocation3], 0 }
   0x3   :  { %13 = vsyncpa [#allocation3 + $0x1], 0 }
   0x4   :  { %14 = vsyncpa [#allocation5], 0 }
   0x5   :  { %15 = vsyncpa [#allocation4], 0 }
   0x6   :  { %17 = vsyncpa [#allocation4 + $0x1], 0  ;;  %s4794_s21 = smov 0   ;;  %s4796_s22 = smov 0  }
   0x7   :  { %s4798_s23 = smov 0   ;;  %s4800_s24 = smov 0  }
   0x8   :  { %s4802_s25 = smov 0   ;;  %s4804_s26 = smov 0  }
   0x9 LB: > { %6054 = sst [smem:[#allocation11_spill]] %s4728_s21  ;;  %s3623_s27 = sadd.s32 4294967295, %s4748_s26   ;;  %s4748_s26 = sphi %s4804_s26, %s23_s26   ;;  %s4744_s25 = sphi %s4802_s25, %s6112_s25   ;;  %s4740_s24 = sphi %s4800_s24, %s6111_s24   ;;  %s4736_s23 = sphi %s4798_s23, %s6110_s23   ;;  %s4732_s22 = sphi %s4796_s22, %s6109_s22   ;;  %s4728_s21 = sphi %s4794_s21, %s6108_s21  }
   0xa   : > { %6055 = sst [smem:[#allocation12_spill]] %s4748_s26  ;;  %s3624_s28 = sadd.s32 4294967294, %s4748_s26  }
   0xb   : > { %p51_p0 = scmp.ne.s32.totalorder %s4736_s23, %s4732_s22  ;;  %p52_p1 = scmp.eq.s32.totalorder %s4748_s26, 0 }
   0xc   : > { %p57_p2 = scmp.ne.s32.totalorder %s4732_s22, %s4728_s21  ;;  %p4832_p3 = scmp.eq.s32.totalorder %s3623_s27, 0 }
   0xd   : > { %p188_p4 = scmp.eq.s32.totalorder %s3623_s27, 1  ;;  %p4836_p5 = por %p52_p1, %p51_p0 }
   0xe   : > { %p194_p6 = scmp.eq.s32.totalorder %s3624_s28, 1  ;;  %p4842_p7 = por %p4832_p3, %p57_p2 }
   0xf   : > { %p4846_p8 = por %p188_p4, %p51_p0  ;;  %p3625_p10 = scmp.ge.s32.totalorder %s4748_s26, 1 }
  0x10   : > { %p4850_p9 = por %p194_p6, %p57_p2  ;;  %p201_p11 = scmp.lt.s32.totalorder %s4748_s26, 3 }
  0x11   : > { %s6059_s9 = scalar_select %p4846_p8, 1, 0 }
  0x12   : > { %s6060_s10 = scalar_select %p4850_p9, 1, 0 }
  0x13   : > { %s6062_s1 = sld [smem:[#allocation29_spill]]  ;;  %p4859_p12 = pnand %p3625_p10, %p201_p11 }
  0x14   : > { %6061 = sst [smem:[#allocation13_spill]] %s6060_s10  ;;  %p4563_p0 = scmp.lt.s32.totalorder %s4748_s26, 2 }
  0x15   : > { %p4550_p1 = pneg %p4859_p12  ;;  %s35_s17 = sadd.s32 1, %s4744_s25 }
  0x16   : > { %p4869_p2 = pnand %p4563_p0, %p4836_p5  ;;  %p4880_p6 = scmp.ge.s32.totalorder %s35_s17, 2 }
  0x17   : > { %p4875_p4 = pnand %p4550_p1, %p4832_p3  ;;  %s237_s19 = sand.u32 1, %s4736_s23  }
  0x19   : > { %s214_s13 = sshll.u32 %s6062_s1, 4  ;;  %p4623_p11 = pneg %p4875_p4  ;;  %s215_s13 = int_to_ptr.vmem [resolvable:$true] %s214_s13 }
  0x1a   : > { %s4621_s20 = scalar_lea.vmem %s215_s13, 16  ;;  %p4629_p13 = scmp.lt.s32.totalorder %s215_s13, %s215_s13 }
  0x1b   : > { %p4622_p10 = scmp.ne.s32.totalorder %s215_s13, %s4621_s20  ;;  %p4630_p9 = scmp.lt.s32.totalorder %s4621_s20, %s4621_s20 }
  0x1d   : > { %p4624_p5 = pnand %p4623_p11, %p4622_p10  ;;  %p4631_p8 = por %p4630_p9, %p4629_p13 }
  0x1f   : > { %p4625_p0 = pneg %p4624_p5 }
  0x21   : > { %p4632_p1 = pnand %p4631_p8, %p4625_p0 }
  0x23   : > { %4635 = shalt.err (!%p4632_p1)
}
  0x24   : > { %s4750_s27 = smov [#allocation6]   ;;  %s6114_s17 = smov (%p4880_p6, %s35_s17), 0 }
  0x25   : > { %4553 = dma.vmem_to_smem (!%p4875_p4), %s215_s13, 16, %s4750_s27, [#allocation5]  }
  0x26   : > { %s4539_s28 = smul.u32 192, %s237_s19  ;;  %s39_s7 = ssub.s32 %s4744_s25, %s6114_s17 }
  0x27   : > { %s4540_s11 = smul.u32 3072, %s4744_s25  ;;  %p42_p9 = scmp.eq.s32.totalorder %s39_s7, 0 }
  0x28   : > { %s241_s16 = scalar_lea.vmem [#allocation2], %s4539_s28  ;;  %s6067_s26 = sadd.s32 1, %s4736_s23 }
  0x29   : > { %s249_s29 = scalar_lea.hbm %s6011_s0, %s4540_s11  ;;  %s250_s1 = sshll.u32 %s241_s16, 4  ;;  %s251_s1 = int_to_ptr.vmem [resolvable:$true] %s250_s1 }
  0x2a   : > { %s4902_s10 = scalar_select %p42_p9, %s4736_s23, %s6067_s26  }
  0x2b   : > { %s238_s21 = scalar_lea.sflag [#allocation3], %s237_s19  ;;  %p4638_p8 = pneg %p4869_p2 }
  0x2c   : > { %s4649_s13 = scalar_lea.vmem %s251_s1, 3072  ;;  %s4751_s18 = smov [#allocation2]  }
  0x2d   : > { %p4650_p13 = scmp.ne.s32.totalorder %s251_s1, %s4649_s13  ;;  %s4654_s27 = sshll.u32 %s4751_s18, 4  ;;  %s4655_s27 = int_to_ptr.vmem [resolvable:$false] %s4654_s27 }
  0x2e   : > { %s4656_s7 = scalar_lea.vmem %s4655_s27, 6144  ;;  %p4657_p10 = scmp.lt.s32.totalorder %s251_s1, %s4655_s27 }
  0x2f   : > { %p4652_p4 = pnand %p4650_p13, %p4638_p8  ;;  %p4658_p11 = scmp.lt.s32.totalorder %s4656_s7, %s4649_s13 }
  0x31   : > { %p4653_p6 = pneg %p4652_p4  ;;  %p4659_p5 = por %p4658_p11, %p4657_p10 }
  0x33   : > { %p4660_p0 = pnand %p4659_p5, %p4653_p6 }
  0x35   : > { %4663 = shalt.err (!%p4660_p0)
}
  0x36   : > { %s4752_s28 = smov 128   ;;  %s4753_s26 = smov 8  }
  0x37   : > { %4557 = dma.hbm_to_vmem [thread:$0]  (!%p4869_p2), %s249_s29, 3072, %s251_s1, %s238_s21, %s4752_s28, %s4752_s28, %s4753_s26  }
  0x38   : > { %262 = sbr.rel (%p4859_p12) target bundleno = 1174 (0x496), region = 44 }
  0x3d   : > { %s4911_s19 = sand.u32 1, %s4732_s22  }
  0x3e   : > { %s4541_s11 = smul.u32 192, %s4911_s19  ;;  %s265_s12 = scalar_lea.sflag [#allocation3], %s4911_s19 }
  0x40   : > { %s4915_s20 = scalar_lea.vmem [#allocation2], %s4541_s11 }
  0x41   : > { %4715 = dma.done.wait (%p4842_p7), %s265_s12, 3072  }
  0x42   : > { %4717 = vsyncadd (%p4842_p7), %s265_s12, 4294964224 }
  0x43   : > { %4719 = dma.done.wait (%p4832_p3), [#allocation5], 16  }
  0x44   : > { %4721 = vsyncadd (%p4832_p3), [#allocation5], 4294967280 }
  0x45   : > { %277 = sfence }
  0x46   : > { %v441_v0 = vld [vmem:[%s6014_s3 + $0x78] sm:$0xff]  ;;  %v440_v1 = vld [vmem:[%s6014_s3 + $0x70] sm:$0xff]  ;;  %v439_v2 = vld [vmem:[%s6014_s3 + $0x68] sm:$0xff]  ;;  %s3648_s8 = sshll.u32 %s4740_s24, 1  ;;  %s3631_s15 = sshll.u32 %s4911_s19, 8  ;;  %vm4755_vm0 = vmmov 0  }
  0x47   : > { %v4935_v3 = vand.u32 4294901760, %v441_v0  ;;  %v4937_v4 = vand.u32 4294901760, %v440_v1  ;;  %v4939_v5 = vand.u32 4294901760, %v439_v2  ;;  %v438_v6 = vld [vmem:[%s6014_s3 + $0x60] sm:$0xff]  ;;  %v437_v7 = vld [vmem:[%s6014_s3 + $0x58] sm:$0xff]  ;;  %v436_v8 = vld [vmem:[%s6014_s3 + $0x50] sm:$0xff] }
  0x48   : > { %v4950_v9 = vand.u32 4294901760, %v438_v6  ;;  %v4952_v10 = vand.u32 4294901760, %v437_v7  ;;  %v4954_v11 = vand.u32 4294901760, %v436_v8  ;;  %v435_v12 = vld [vmem:[%s6014_s3 + $0x48] sm:$0xff]  ;;  %v434_v13 = vld [vmem:[%s6014_s3 + $0x40] sm:$0xff]  ;;  %v433_v18 = vld [vmem:[%s6014_s3 + $0x38] sm:$0xff] }
  0x49   : > { %3993 = vmatprep.subr.mxu0 %v4935_v3  ;;  %v4964_v14 = vsub.f32 %v441_v0, %v4935_v3  ;;  %v4967_v15 = vsub.f32 %v440_v1, %v4937_v4  ;;  %v4969_v16 = vand.u32 4294901760, %v435_v12  ;;  %v4972_v17 = vsub.f32 %v439_v2, %v4939_v5  ;;  %s332_s14 = sadd.s32 1, %s3648_s8  ;;  %v432_v25 = vld [vmem:[%s6014_s3 + $0x30] sm:$0xff]  ;;  %v431_v30 = vld [vmem:[%s6014_s3 + $0x28] sm:$0xff]  ;;  %s5018_s18 = sld [smem:[#allocation6 + %s3648_s8]]  ;;  %v430_v39 = vld [vmem:[%s6014_s3 + $0x20] sm:$0xff] }
  0x4a   : > { %3994 = vmatpush3.msra.mxu0 %v4935_v3  ;;  %v4979_v19 = vsub.f32 %v438_v6, %v4950_v9  ;;  %v4982_v20 = vsub.f32 %v437_v7, %v4952_v10  ;;  %v4996_v24 = vand.u32 4294901760, %v434_v13  ;;  %v5005_v27 = vand.u32 4294901760, %v433_v18  ;;  %s5030_s27 = sld [smem:[#allocation6 + %s332_s14]]  ;;  %v5060_v46 = vld [vmem:[%s6014_s3 + $0x18] sm:$0xff]  ;;  %v5065_v47 = vld [vmem:[%s6014_s3 + $0x10] sm:$0xff]  ;;  %v5095_v59 = vld [vmem:[%s6014_s3 + $0x8] sm:$0xff] }
  0x4b   : > { %3995 = vmatprep.subr.mxu0 %v4937_v4  ;;  %v4988_v21 = vand.u32 4294901760, %v4964_v14  ;;  %v4991_v22 = vand.u32 4294901760, %v4967_v15  ;;  %v4994_v23 = vand.u32 4294901760, %v4972_v17  ;;  %v5011_v29 = vsub.f32 %v436_v8, %v4954_v11  ;;  %v5109_v0 = vld [vmem:[%s6014_s3] sm:$0xff]  ;;  %s5152_s16 = scalar_lea.vmem [#allocation7], %s3631_s15  ;;  %s3509_s11 = scalar_lea.sflag [#allocation4], %s4911_s19 }
  0x4c   : > { %3996 = vmatpush3.msra.mxu0 %v4937_v4  ;;  %v5003_v26 = vand.u32 4294901760, %v4979_v19  ;;  %v5008_v28 = vand.u32 4294901760, %v4982_v20  ;;  %v5028_v34 = vsub.f32 %v435_v12, %v4969_v16  ;;  %v5037_v37 = vand.u32 4294901760, %v432_v25  ;;  %v304_v1 = vld [vmem:[%s4915_s20] sm:$0xff]  ;;  %s3524_s8 = sshll.u32 %s5152_s16, 4  ;;  %p6102_p7 = scmp.ne.s32.totalorder %s6059_s9, 0  ;;  %s5961_s8 = int_to_ptr.vmem [resolvable:$true] %s3524_s8 }
  0x4d   : > { %6068 = vst [vmem:[#allocation14_spill] sm:$0xff] %v4991_v22  ;;  %6069 = vst [vmem:[#allocation15_spill] sm:$0xff] %v4994_v23  ;;  %3997 = vmatprep.subr.mxu0 %v4939_v5  ;;  %v607_v31 = vsub.f32 %v4964_v14, %v4988_v21  ;;  %v614_v32 = vsub.f32 %v4967_v15, %v4991_v22  ;;  %v621_v33 = vsub.f32 %v4972_v17, %v4994_v23  ;;  %v3632_v8 = vld [vmem:[%s4915_s20 + $0x40] sm:$0xff]  ;;  %vm1385_vm1 = vcmask 523264   ;;  %s4664_s12 = scalar_lea.vmem %s5961_s8, 4096 }
  0x4e   : > { %6070 = vst [vmem:[#allocation16_spill] sm:$0xff] %v5003_v26  ;;  %6071 = vst [vmem:[#allocation17_spill] sm:$0xff] %v5008_v28  ;;  %3998 = vmatpush3.msra.mxu0 %v4939_v5  ;;  %v628_v35 = vsub.f32 %v4979_v19, %v5003_v26  ;;  %v635_v36 = vsub.f32 %v4982_v20, %v5008_v28  ;;  %v5040_v38 = vand.u32 4294901760, %v5011_v29  ;;  %v5046_v42 = vand.u32 4294901760, %v431_v30  ;;  %v308_v28 = vld [vmem:[%s4915_s20 + $0x20] sm:$0xff]  ;;  %p4665_p3 = scmp.ne.s32.totalorder %s5961_s8, %s4664_s12 }
  0x4f   : > { %3999 = vmatprep.subr.mxu0 %v4950_v9  ;;  %v608_v40 = vand.u32 4294901760, %v607_v31  ;;  %v615_v41 = vand.u32 4294901760, %v614_v32  ;;  %v5049_v43 = vand.u32 4294901760, %v5028_v34  ;;  %v5055_v45 = vsub.f32 %v434_v13, %v4996_v24  ;;  %v3640_v31 = vld [vmem:[%s4915_s20 + $0x80] sm:$0xff] }
  0x50   : > { %6072 = vst [vmem:[#allocation18_spill] sm:$0xff] %v5040_v38  ;;  %4000 = vmatpush3.msra.mxu0 %v4950_v9  ;;  %v642_v44 = vsub.f32 %v5011_v29, %v5040_v38  ;;  %v622_v48 = vand.u32 4294901760, %v621_v33  ;;  %v629_v49 = vand.u32 4294901760, %v628_v35  ;;  %v5068_v50 = vand.u32 4294901760, %v430_v39  ;;  %p4666_p12 = pnand %p4665_p3, %p6102_p7 }
  0x51   : > { %6073 = vst [vmem:[#allocation19_spill] sm:$0xff] %v5049_v43  ;;  %4001 = vmatprep.subr.mxu0 %v4952_v10  ;;  %4037 = vmatprep.subr.mxu1 %v608_v40  ;;  %v5071_v51 = vsub.f32 %v433_v18, %v5005_v27  ;;  %v636_v52 = vand.u32 4294901760, %v635_v36  ;;  %v649_v53 = vsub.f32 %v5028_v34, %v5049_v43  ;;  %v5077_v54 = vand.u32 4294901760, %v5055_v45 }
  0x52   : > { %4002 = vmatpush3.msra.mxu0 %v4952_v10  ;;  %4038 = vmatpush3.msra.mxu1 %v608_v40  ;;  %v5080_v55 = vsub.f32 %v432_v25, %v5037_v37  ;;  %v5084_v56 = vand.u32 4294901760, %v5060_v46  ;;  %v5090_v58 = vand.u32 4294901760, %v5065_v47  ;;  %v5098_v60 = vsub.f32 %v431_v30, %v5046_v42  ;;  %p4667_p2 = pneg %p4666_p12 }
  0x53   : > { %6074 = vst [vmem:[#allocation20_spill] sm:$0xff] %v5077_v54  ;;  %4003 = vmatprep.subr.mxu0 %v4954_v11  ;;  %4039 = vmatprep.subr.mxu1 %v615_v41  ;;  %v5087_v57 = vand.u32 4294901760, %v5071_v51  ;;  %v643_v61 = vand.u32 4294901760, %v642_v44  ;;  %v656_v62 = vsub.f32 %v5055_v45, %v5077_v54  ;;  %v5113_v2 = vstv %s5018_s18 }
  0x54   : > { %4004 = vmatpush3.msra.mxu0 %v4954_v11  ;;  %4040 = vmatpush3.msra.mxu1 %v615_v41  ;;  %v5104_v63 = vand.u32 4294901760, %v5080_v55  ;;  %v5117_v6 = vand.u32 4294901760, %v5098_v60  ;;  %v5120_v7 = vsub.f32 %v430_v39, %v5068_v50  ;;  %v335_v12 = vsub.f32 %v304_v1, %v5113_v2 }
  0x55   : > { %6075 = vst [vmem:[#allocation21_spill] sm:$0xff] %v5087_v57  ;;  %4005 = vmatprep.subr.mxu0 %v4969_v16  ;;  %4041 = vmatprep.subr.mxu1 %v622_v48  ;;  %v5126_v13 = vstv %s5030_s27  ;;  %v650_v18 = vand.u32 4294901760, %v649_v53  ;;  %v663_v25 = vsub.f32 %v5071_v51, %v5087_v57  ;;  %v5132_v30 = vand.u32 4294901760, %v5095_v59  ;;  %v305_v53 = vld [vmem:[%s4915_s20 + $0x8] sm:$0xff]  ;;  %s3686_s27 = sshll.u32 %s4740_s24, 12  ;;  %s4756_s24 = smov [#allocation7]  }
  0x56   : > { %6076 = vst [vmem:[#allocation22_spill] sm:$0xff] %v5104_v63  ;;  %6077 = vst [vmem:[#allocation23_spill] sm:$0xff] %v5117_v6  ;;  %4006 = vmatpush3.msra.mxu0 %v4969_v16  ;;  %4042 = vmatpush3.msra.mxu1 %v622_v48  ;;  %v360_v32 = vsub.f32 %v304_v1, %v5126_v13  ;;  %v670_v33 = vsub.f32 %v5080_v55, %v5104_v63  ;;  %v5140_v35 = vand.u32 4294901760, %v5109_v0  ;;  %v3633_v57 = vld [vmem:[%s4915_s20 + $0x48] sm:$0xff]  ;;  %vm1934_vm2 = vcmask 31744   ;;  %s5959_s26 = scalar_lea.hbm %s6017_s6, %s3686_s27  ;;  %s4668_s1 = sshll.u32 %s4756_s24, 4  ;;  %s4669_s1 = int_to_ptr.vmem [resolvable:$false] %s4668_s1 }
  0x57   : > { %6078 = vst [vmem:[#allocation24_spill] sm:$0xff] %v5132_v30  ;;  %4007 = vmatprep.subr.mxu0 %v4996_v24  ;;  %4043 = vmatprep.subr.mxu1 %v629_v49  ;;  %v343_v36 = vmul.f32 %v335_v12, %v335_v12  ;;  %v385_v39 = vsub.f32 %v3640_v31, %v5113_v2  ;;  %v657_v40 = vand.u32 4294901760, %v656_v62  ;;  %v5150_v63 = vand.u32 4294901760, %v5120_v7  ;;  %s4670_s21 = scalar_lea.vmem %s4669_s1, 8192  ;;  %p4671_p1 = scmp.lt.s32.totalorder %s5961_s8, %s4669_s1 }
  0x58   : > { %4008 = vmatpush3.msra.mxu0 %v4996_v24  ;;  %4044 = vmatpush3.msra.mxu1 %v629_v49  ;;  %v677_v41 = vsub.f32 %v5098_v60, %v5117_v6  ;;  %v368_v44 = vmul.f32 %v360_v32, %v360_v32  ;;  %v410_v48 = vadd.f32 %v3632_v8, %v304_v1  ;;  %v3641_v1 = vld [vmem:[%s4915_s20 + $0x88] sm:$0xff]  ;;  %v664_v12 = vand.u32 4294901760, %v663_v25  ;;  %p4672_p9 = scmp.lt.s32.totalorder %s4670_s21, %s4664_s12 }
  0x59   : > { %4009 = vmatprep.subr.mxu0 %v5005_v27  ;;  %4045 = vmatprep.subr.mxu1 %v636_v52  ;;  %6079 = vst [vmem:[#allocation25_spill] sm:$0xff] %v5150_v63  ;;  %351 = vst [vmem:[%s5152_s16] sm:$0xff] %v343_v36  ;;  %v393_v49 = vmul.f32 %v385_v39, %v385_v39  ;;  %v5157_v62 = vsub.f32 %v5060_v46, %v5084_v56  ;;  %vm1959_vm3 = vcmask 1043456   ;;  %vm2711_vm4 = vcmask 64512  }
  0x5a   : > { %v336_v8 = vsub.f32 %v305_v53, %v5113_v2  ;;  %4010 = vmatpush3.msra.mxu0 %v5005_v27  ;;  %4046 = vmatpush3.msra.mxu1 %v636_v52  ;;  %3649 = vst [vmem:[%s5152_s16 + $0x40] sm:$0xff] %v368_v44  ;;  %v418_v32 = vadd.f32 %v3640_v31, %v410_v48  ;;  %p4673_p8 = por %p4672_p9, %p4671_p1 }
  0x5b   : > { %v361_v6 = vsub.f32 %v305_v53, %v5126_v13  ;;  %v386_v54 = vsub.f32 %v3641_v1, %v5113_v2  ;;  %4011 = vmatprep.subr.mxu0 %v5037_v37  ;;  %4047 = vmatprep.subr.mxu1 %v643_v61  ;;  %3657 = vst [vmem:[%s5152_s16 + $0x80] sm:$0xff] %v393_v49  ;;  %v5168_v46 = vand.u32 4294901760, %v5157_v62 }
  0x5c   : > { %v344_v36 = vmul.f32 %v336_v8, %v336_v8  ;;  %v411_v39 = vadd.f32 %v3633_v57, %v305_v53  ;;  %v5172_v52 = vsub.f32 %v5065_v47, %v5090_v58  ;;  %4012 = vmatpush3.msra.mxu0 %v5037_v37  ;;  %4048 = vmatpush3.msra.mxu1 %v643_v61  ;;  %v5175_v25 = vand.u32 4294901760, %v418_v32  ;;  %p4674_p13 = pnand %p4673_p8, %p4667_p2 }
  0x5d   : > { %6080 = vst [vmem:[#allocation26_spill] sm:$0xff] %v5168_v46  ;;  %v369_v31 = vmul.f32 %v361_v6, %v361_v6  ;;  %v394_v44 = vmul.f32 %v386_v54, %v386_v54  ;;  %v5179_v48 = vsub.f32 %v5095_v59, %v5132_v30  ;;  %4013 = vmatprep.subr.mxu0 %v5046_v42  ;;  %v306_v54 = vld [vmem:[%s4915_s20 + $0x10] sm:$0xff]  ;;  %v678_v8 = vand.u32 4294901760, %v677_v41 }
  0x5e   : > { %4049 = vmatprep.subr.mxu1 %v650_v18  ;;  %v684_v47 = vsub.f32 %v5120_v7, %v5150_v63  ;;  %v691_v57 = vsub.f32 %v5157_v62, %v5168_v46  ;;  %352 = vst [vmem:[%s5152_s16 + $0x8] sm:$0xff] %v344_v36  ;;  %v419_v61 = vadd.f32 %v3641_v1, %v411_v39  ;;  %v5188_v53 = vand.u32 4294901760, %v5172_v52 }
  0x5f   : > { %4014 = vmatpush3.msra.mxu0 %v5046_v42  ;;  %4050 = vmatpush3.msra.mxu1 %v650_v18  ;;  %v5193_v59 = vsub.f32 %v418_v32, %v5175_v25  ;;  %3650 = vst [vmem:[%s5152_s16 + $0x48] sm:$0xff] %v369_v31  ;;  %3658 = vst [vmem:[%s5152_s16 + $0x88] sm:$0xff] %v394_v44  ;;  %v337_v6 = vsub.f32 %v306_v54, %v5113_v2  ;;  %v671_v1 = vand.u32 4294901760, %v670_v33  ;;  %v3634_v32 = vld [vmem:[%s4915_s20 + $0x50] sm:$0xff] }
  0x60   : > { %6081 = vst [vmem:[#allocation27_spill] sm:$0xff] %v5188_v53  ;;  %v362_v49 = vsub.f32 %v306_v54, %v5126_v13  ;;  %4015 = vmatprep.subr.mxu0 %v5068_v50  ;;  %4051 = vmatprep.subr.mxu1 %v657_v40  ;;  %v5200_v36 = vand.u32 4294901760, %v419_v61  ;;  %v5203_v18 = vand.u32 4294901760, %v5179_v48  ;;  %v5210_v31 = vsub.f32 %v5109_v0, %v5140_v35  ;;  %v3642_v33 = vld [vmem:[%s4915_s20 + $0x90] sm:$0xff]  ;;  %v307_v0 = vld [vmem:[%s4915_s20 + $0x18] sm:$0xff] }
  0x61   : > { %4016 = vmatpush3.msra.mxu0 %v5068_v50  ;;  %4052 = vmatpush3.msra.mxu1 %v657_v40  ;;  %v345_v41 = vmul.f32 %v337_v6, %v337_v6  ;;  %v685_v46 = vand.u32 4294901760, %v684_v47  ;;  %v698_v40 = vsub.f32 %v5172_v52, %v5188_v53  ;;  %v387_v39 = vsub.f32 %v3642_v33, %v5113_v2 }
  0x62   : > { %6082 = vst [vmem:[#allocation28_spill] sm:$0xff] %v5203_v18  ;;  %v370_v44 = vmul.f32 %v362_v49, %v362_v49  ;;  %4017 = vmatprep.subr.mxu0 %v5084_v56  ;;  %4053 = vmatprep.subr.mxu1 %v664_v12  ;;  %v5215_v63 = vsub.f32 %v419_v61, %v5200_v36  ;;  %v6083_v6 = vand.u32 4294901760, %v5193_v59  ;;  %v5225_v43 = vand.u32 4294901760, %v691_v57  ;;  %v3635_v61 = vld [vmem:[%s4915_s20 + $0x58] sm:$0xff] }
  0x63   : > { %4018 = vmatpush3.msra.mxu0 %v5084_v56  ;;  %4054 = vmatpush3.msra.mxu1 %v664_v12  ;;  %353 = vst [vmem:[%s5152_s16 + $0x10] sm:$0xff] %v345_v41  ;;  %v412_v47 = vadd.f32 %v3634_v32, %v306_v54  ;;  %v338_v53 = vsub.f32 %v307_v0, %v5113_v2  ;;  %v3643_v57 = vld [vmem:[%s4915_s20 + $0x98] sm:$0xff]  ;;  %v5239_v54 = vand.u32 4294901760, %v5210_v31 }
  0x64   : > { %v526_v49 = vsub.f32 %v5193_v59, %v6083_v6  ;;  %3651 = vst [vmem:[%s5152_s16 + $0x50] sm:$0xff] %v370_v44  ;;  %4019 = vmatprep.subr.mxu0 %v5090_v58  ;;  %4055 = vmatprep.subr.mxu1 %v671_v1  ;;  %v705_v12 = vsub.f32 %v5179_v48, %v5203_v18  ;;  %v3636_v18 = vld [vmem:[%s4915_s20 + $0x60] sm:$0xff]  ;;  %v6084_v26 = vand.u32 4294901760, %v5215_v63 }
  0x65   : > { %v395_v6 = vmul.f32 %v387_v39, %v387_v39  ;;  %v363_v41 = vsub.f32 %v307_v0, %v5126_v13  ;;  %4020 = vmatpush3.msra.mxu0 %v5090_v58  ;;  %4056 = vmatpush3.msra.mxu1 %v671_v1  ;;  %v5241_v32 = vadd.f32 %v3642_v33, %v412_v47  ;;  %v3644_v47 = vld [vmem:[%s4915_s20 + $0xa0] sm:$0xff] }
  0x66   : > { %v346_v44 = vmul.f32 %v338_v53, %v338_v53  ;;  %v388_v38 = vsub.f32 %v3643_v57, %v5113_v2  ;;  %4021 = vmatprep.subr.mxu0 %v5132_v30  ;;  %4057 = vmatprep.subr.mxu1 %v678_v8  ;;  %v527_v39 = vand.u32 4294901760, %v526_v49  ;;  %v536_v1 = vsub.f32 %v5215_v63, %v6084_v26 }
  0x67   : > { %3659 = vst [vmem:[%s5152_s16 + $0x90] sm:$0xff] %v395_v6  ;;  %v371_v23 = vmul.f32 %v363_v41, %v363_v41  ;;  %v413_v33 = vadd.f32 %v3635_v61, %v307_v0  ;;  %4022 = vmatpush3.msra.mxu0 %v5132_v30  ;;  %4058 = vmatpush3.msra.mxu1 %v678_v8  ;;  %v309_v41 = vld [vmem:[%s4915_s20 + $0x28] sm:$0xff] }
  0x68   : > { %354 = vst [vmem:[%s5152_s16 + $0x18] sm:$0xff] %v346_v44  ;;  %v396_v53 = vmul.f32 %v388_v38, %v388_v38  ;;  %v339_v22 = vsub.f32 %v308_v28, %v5113_v2  ;;  %v364_v49 = vsub.f32 %v308_v28, %v5126_v13  ;;  %4023 = vmatprep.subr.mxu0 %v5140_v35  ;;  %v537_v26 = vand.u32 4294901760, %v536_v1  ;;  %v3637_v8 = vld [vmem:[%s4915_s20 + $0x68] sm:$0xff] }
  0x69   : > { %4059 = vmatprep.subr.mxu1 %v685_v46  ;;  %3652 = vst [vmem:[%s5152_s16 + $0x58] sm:$0xff] %v371_v23  ;;  %v421_v6 = vadd.f32 %v3643_v57, %v413_v33  ;;  %v389_v0 = vsub.f32 %v3644_v47, %v5113_v2  ;;  %v414_v61 = vadd.f32 %v3636_v18, %v308_v28  ;;  %v699_v38 = vand.u32 4294901760, %v698_v40  ;;  %v3645_v57 = vld [vmem:[%s4915_s20 + $0xa8] sm:$0xff]  ;;  %v310_v33 = vld [vmem:[%s4915_s20 + $0x30] sm:$0xff] }
  0x6a   : > { %4024 = vmatpush3.msra.mxu0 %v5140_v35  ;;  %4060 = vmatpush3.msra.mxu1 %v685_v46  ;;  %v712_v44 = vsub.f32 %v5210_v31, %v5239_v54  ;;  %3660 = vst [vmem:[%s5152_s16 + $0x98] sm:$0xff] %v396_v53  ;;  %v347_v30 = vmul.f32 %v339_v22, %v339_v22  ;;  %v5267_v28 = vand.u32 4294901760, %v5241_v32  ;;  %v706_v40 = vand.u32 4294901760, %v705_v12  ;;  %v3638_v12 = vld [vmem:[%s4915_s20 + $0x70] sm:$0xff] }
  0x6b   : > { %v372_v23 = vmul.f32 %v364_v49, %v364_v49  ;;  %4025 = vmatprep.mubr.f32.mxu0 %v527_v39  ;;  %4061 = vmatprep.subr.mxu1 %v5225_v43  ;;  %v397_v18 = vmul.f32 %v389_v0, %v389_v0  ;;  %v340_v46 = vsub.f32 %v309_v41, %v5113_v2  ;;  %v5279_v53 = vand.u32 4294901760, %v421_v6 }
  0x6c   : > { %4081 = vmatprep.subr.mxu0 %v4964_v14  ;;  %4026 = vmatmul.mubr.f32.vlgmr.msra.gmra.mxu0 %v537_v26  ;;  %355 = vst [vmem:[%s5152_s16 + $0x20] sm:$0xff] %v347_v30  ;;  %v365_v22 = vsub.f32 %v309_v41, %v5126_v13  ;;  %v390_v39 = vsub.f32 %v3645_v57, %v5113_v2  ;;  %v713_v0 = vand.u32 4294901760, %v712_v44 }
  0x6d   : > { %3653 = vst [vmem:[%s5152_s16 + $0x60] sm:$0xff] %v372_v23  ;;  %v415_v1 = vadd.f32 %v3637_v8, %v309_v41  ;;  %4062 = vmatpush3.msra.mxu1 %v5225_v43  ;;  %4082 = vmatpush3.msra.mxu0 %v4964_v14  ;;  %3661 = vst [vmem:[%s5152_s16 + $0xa0] sm:$0xff] %v397_v18  ;;  %v422_v49 = vadd.f32 %v3644_v47, %v414_v61  ;;  %v3646_v61 = vld [vmem:[%s4915_s20 + $0xb0] sm:$0xff]  ;;  %v311_v23 = vld [vmem:[%s4915_s20 + $0x38] sm:$0xff] }
  0x6e   : > { %v348_v26 = vmul.f32 %v340_v46, %v340_v46  ;;  %v341_v30 = vsub.f32 %v310_v33, %v5113_v2  ;;  %4063 = vmatprep.subr.mxu1 %v699_v38  ;;  %4083 = vmatprep.subr.mxu0 %v4967_v15  ;;  %v373_v41 = vmul.f32 %v365_v22, %v365_v22 }
  0x6f   : > { %v398_v43 = vmul.f32 %v390_v39, %v390_v39  ;;  %4064 = vmatpush3.msra.mxu1 %v699_v38  ;;  %4084 = vmatpush3.msra.mxu0 %v4967_v15  ;;  %v5288_v14 = vsub.f32 %v5241_v32, %v5267_v28  ;;  %v423_v47 = vadd.f32 %v3645_v57, %v415_v1  ;;  %v5302_v18 = vand.u32 4294901760, %v422_v49  ;;  %v3639_v57 = vld [vmem:[%s4915_s20 + $0x78] sm:$0xff] }
  0x70   : > { %356 = vst [vmem:[%s5152_s16 + $0x28] sm:$0xff] %v348_v26  ;;  %v349_v8 = vmul.f32 %v341_v30, %v341_v30  ;;  %4065 = vmatprep.subr.mxu1 %v706_v40  ;;  %4085 = vmatprep.subr.mxu0 %v4972_v17  ;;  %3654 = vst [vmem:[%s5152_s16 + $0x68] sm:$0xff] %v373_v41  ;;  %v366_v44 = vsub.f32 %v310_v33, %v5126_v13 }
  0x71   : > { %3662 = vst [vmem:[%s5152_s16 + $0xa8] sm:$0xff] %v398_v43  ;;  %v391_v38 = vsub.f32 %v3646_v61, %v5113_v2  ;;  %v416_v15 = vadd.f32 %v3638_v12, %v310_v33  ;;  %4066 = vmatpush3.msra.mxu1 %v706_v40  ;;  %4086 = vmatpush3.msra.mxu0 %v4972_v17  ;;  %v5308_v22 = vand.u32 4294901760, %v423_v47  ;;  %v545_v33 = vand.u32 4294901760, %v5288_v14 }
  0x72   : > { %v5300_v32 = vsub.f32 %v421_v6, %v5279_v53  ;;  %357 = vst [vmem:[%s5152_s16 + $0x30] sm:$0xff] %v349_v8  ;;  %v342_v46 = vsub.f32 %v311_v23, %v5113_v2  ;;  %4067 = vmatprep.subr.mxu1 %v713_v0  ;;  %4087 = vmatprep.subr.mxu0 %v4979_v19  ;;  %v3647_v6 = vld [vmem:[%s4915_s20 + $0xb8] sm:$0xff] }
  0x73   : > { %v374_v39 = vmul.f32 %v366_v44, %v366_v44  ;;  %v399_v40 = vmul.f32 %v391_v38, %v391_v38  ;;  %4068 = vmatpush3.msra.mxu1 %v713_v0  ;;  %4069 = vmatprep.mubr.f32.mxu1 %v5175_v25  ;;  %v424_v17 = vadd.f32 %v3646_v61, %v416_v15 }
  0x74   : > { %v350_v1 = vmul.f32 %v342_v46, %v342_v46  ;;  %4088 = vmatpush3.msra.mxu0 %v4979_v19  ;;  %4070 = vmatmul.mubr.f32.vlgmr.msra.gmra.mxu1 %v5200_v36  ;;  %v367_v26 = vsub.f32 %v311_v23, %v5126_v13  ;;  %v392_v12 = vsub.f32 %v3647_v6, %v5113_v2  ;;  %v555_v0 = vand.u32 4294901760, %v5300_v32 }
  0x75   : > { %3655 = vst [vmem:[%s5152_s16 + $0x70] sm:$0xff] %v374_v39  ;;  %3663 = vst [vmem:[%s5152_s16 + $0xb0] sm:$0xff] %v399_v40  ;;  %v417_v30 = vadd.f32 %v3639_v57, %v311_v23  ;;  %4089 = vmatprep.subr.mxu0 %v4982_v20  ;;  %4125 = vmatprep.subr.mxu1 %v4935_v3  ;;  %v5323_v19 = vsub.f32 %v422_v49, %v5302_v18  ;;  %v5333_v43 = vand.u32 4294901760, %v424_v17 }
  0x76   : > { %358 = vst [vmem:[%s5152_s16 + $0x38] sm:$0xff] %v350_v1  ;;  %4090 = vmatpush3.msra.mxu0 %v4982_v20  ;;  %4126 = vmatpush3.msra.mxu1 %v4935_v3  ;;  %v5329_v13 = vsub.f32 %v423_v47, %v5308_v22  ;;  %v375_v2 = vmul.f32 %v367_v26, %v367_v26  ;;  %v6092_v1 = vld [vmem:[#allocation18_spill] sm:$0xff] }
  0x77   : > { %v400_v41 = vmul.f32 %v392_v12, %v392_v12  ;;  %4091 = vmatprep.subr.mxu0 %v5011_v29  ;;  %4127 = vmatprep.subr.mxu1 %v4937_v4  ;;  %v425_v61 = vadd.f32 %v3647_v6, %v417_v30  ;;  %v546_v20 = vsub.f32 %v5288_v14, %v545_v33  ;;  %v565_v47 = vand.u32 4294901760, %v5323_v19  ;;  %v6091_v6 = vld [vmem:[#allocation17_spill] sm:$0xff] }
  0x78   : > { %4092 = vmatpush3.msra.mxu0 %v5011_v29  ;;  %4128 = vmatpush3.msra.mxu1 %v4937_v4  ;;  %3656 = vst [vmem:[%s5152_s16 + $0x78] sm:$0xff] %v375_v2  ;;  %v556_v49 = vsub.f32 %v5300_v32, %v555_v0  ;;  %v575_v29 = vand.u32 4294901760, %v5329_v13  ;;  %v5356_v44 = vsub.f32 %v424_v17, %v5333_v43 }
  0x79   : > { %3664 = vst [vmem:[%s5152_s16 + $0xb8] sm:$0xff] %v400_v41  ;;  %4093 = vmatprep.subr.mxu0 %v5028_v34  ;;  %4129 = vmatprep.subr.mxu1 %v4939_v5  ;;  %v5348_v8 = vand.u32 4294901760, %v425_v61  ;;  %v547_v38 = vand.u32 4294901760, %v546_v20  ;;  %v566_v23 = vsub.f32 %v5323_v19, %v565_v47 }
  0x7a   : > { %4094 = vmatpush3.msra.mxu0 %v5028_v34  ;;  %4130 = vmatpush3.msra.mxu1 %v4939_v5  ;;  %v557_v34 = vand.u32 4294901760, %v556_v49  ;;  %v585_v57 = vand.u32 4294901760, %v5356_v44 }
  0x7b   : > { %4095 = vmatprep.subr.mxu0 %v5055_v45  ;;  %4131 = vmatprep.subr.mxu1 %v4950_v9  ;;  %v5361_v15 = vsub.f32 %v425_v61, %v5348_v8 }
  0x7c   : > { %4096 = vmatpush3.msra.mxu0 %v5055_v45  ;;  %4132 = vmatpush3.msra.mxu1 %v4950_v9  ;;  %v576_v45 = vsub.f32 %v5329_v13, %v575_v29  ;;  %v586_v40 = vsub.f32 %v5356_v44, %v585_v57 }
  0x7d   : > { %4097 = vmatprep.subr.mxu0 %v5071_v51  ;;  %4133 = vmatprep.subr.mxu1 %v4952_v10  ;;  %v595_v46 = vand.u32 4294901760, %v5361_v15 }
  0x7e   : > { %4098 = vmatpush3.msra.mxu0 %v5071_v51  ;;  %4134 = vmatpush3.msra.mxu1 %v4952_v10  ;;  %v567_v51 = vand.u32 4294901760, %v566_v23  ;;  %v577_v39 = vand.u32 4294901760, %v576_v45 }
  0x7f   : > { %4099 = vmatprep.subr.mxu0 %v5080_v55  ;;  %4135 = vmatprep.subr.mxu1 %v4954_v11 }
  0x80   : > { %4028 = vmatprep.mubr.f32.mxu0 %v547_v38  ;;  %4100 = vmatpush3.msra.mxu0 %v5080_v55  ;;  %v596_v55 = vsub.f32 %v5361_v15, %v595_v46 }
  0x81   : > { %4136 = vmatpush3.msra.mxu1 %v4954_v11  ;;  %4029 = vmatmul.mubr.f32.gmra.mxu0 %v557_v34 }
  0x82   : > { %4101 = vmatprep.subr.mxu0 %v5098_v60  ;;  %4137 = vmatprep.subr.mxu1 %v4969_v16  ;;  %v597_v17 = vand.u32 4294901760, %v596_v55  ;;  %v1384_v55 = vld [vmem:[%s6013_s2] sm:$0xf] }
  0x83   : > { %4102 = vmatpush3.msra.mxu0 %v5098_v60  ;;  %4138 = vmatpush3.msra.mxu1 %v4969_v16  ;;  %v587_v60 = vand.u32 4294901760, %v586_v40 }
  0x84   : > { %4103 = vmatprep.subr.mxu0 %v5120_v7  ;;  %4139 = vmatprep.subr.mxu1 %v4996_v24 }
  0x85   : > { %4031 = vmatprep.mubr.f32.mxu0 %v567_v51  ;;  %4104 = vmatpush3.msra.mxu0 %v5120_v7  ;;  %v6085_v7 = vld [vmem:[#allocation14_spill] sm:$0xff] }
  0x86   : > { %4140 = vmatpush3.msra.mxu1 %v4996_v24  ;;  %4032 = vmatmul.mubr.f32.gmra.mxu0 %v577_v39 }
  0x87   : > { %4072 = vmatprep.mubr.f32.mxu1 %v5267_v28  ;;  %4105 = vmatprep.subr.mxu0 %v5157_v62 }
  0x88   : > { %4141 = vmatprep.subr.mxu1 %v5005_v27  ;;  %4073 = vmatmul.mubr.f32.gmra.mxu1 %v5279_v53 }
  0x89   : > { %4106 = vmatpush3.msra.mxu0 %v5157_v62  ;;  %4142 = vmatpush3.msra.mxu1 %v5005_v27  ;;  %v6086_v62 = vld [vmem:[#allocation24_spill] sm:$0xff] }
  0x8a   : > { %4107 = vmatprep.subr.mxu0 %v5172_v52  ;;  %4143 = vmatprep.subr.mxu1 %v5037_v37 }
  0x8b   : > { %4034 = vmatprep.mubr.f32.mxu0 %v587_v60  ;;  %4108 = vmatpush3.msra.mxu0 %v5172_v52  ;;  %v6087_v52 = vld [vmem:[#allocation15_spill] sm:$0xff] }
  0x8c   : > { %4144 = vmatpush3.msra.mxu1 %v5037_v37  ;;  %4035 = vmatmul.mubr.f32.gmra.mxu0 %v597_v17 }
  0x8d   : > { %4075 = vmatprep.mubr.f32.mxu1 %v5302_v18  ;;  %4109 = vmatprep.subr.mxu0 %v5179_v48 }
  0x8e   : > { %4145 = vmatprep.subr.mxu1 %v5046_v42  ;;  %4076 = vmatmul.mubr.f32.gmra.mxu1 %v5308_v22 }
  0x8f   : > { %4110 = vmatpush3.msra.mxu0 %v5179_v48  ;;  %4146 = vmatpush3.msra.mxu1 %v5046_v42  ;;  %v6089_v48 = vand.u32 4294901760, %v5193_v59 }
  0x90   : > { %4111 = vmatprep.subr.mxu0 %v5210_v31  ;;  %4147 = vmatprep.subr.mxu1 %v5068_v50 }
  0x91   : > { %4112 = vmatpush3.msra.mxu0 %v5210_v31  ;;  %4113 = vmatprep.mubr.f32.mxu0 %v5193_v59  ;;  %v6090_v31 = vand.u32 4294901760, %v5215_v63  ;;  %v6100_v59 = vld [vmem:[#allocation27_spill] sm:$0xff] }
  0x92   : > { %4148 = vmatpush3.msra.mxu1 %v5068_v50  ;;  %4078 = vmatprep.mubr.f32.mxu1 %v5333_v43 }
  0x93   : > { %4114 = vmatmul.mubr.f32.vlgmr.msra.gmra.mxu0 %v5215_v63  ;;  %4149 = vmatprep.subr.mxu1 %v5084_v56  ;;  %v6093_v63 = vld [vmem:[#allocation19_spill] sm:$0xff] }
  0x94   : > { %4169 = vmatprep.subr.mxu0 %v4988_v21  ;;  %4079 = vmatmul.mubr.f32.gmra.mxu1 %v5348_v8 }
  0x95   : > { %4150 = vmatpush3.msra.mxu1 %v5084_v56  ;;  %4170 = vmatpush3.msra.mxu0 %v4988_v21  ;;  %v6088_v21 = vld [vmem:[#allocation16_spill] sm:$0xff] }
  0x96   : > { %4151 = vmatprep.subr.mxu1 %v5090_v58  ;;  %4171 = vmatprep.subr.mxu0 %v6085_v7 }
  0x97   : > { %4116 = vmatprep.mubr.f32.mxu0 %v5288_v14  ;;  %4152 = vmatpush3.msra.mxu1 %v5090_v58 }
  0x98   : > { %4172 = vmatpush3.msra.mxu0 %v6085_v7  ;;  %4153 = vmatprep.subr.mxu1 %v6086_v62 }
  0x99   : > { %4117 = vmatmul.mubr.f32.gmra.mxu0 %v5300_v32  ;;  %4173 = vmatprep.subr.mxu0 %v6087_v52 }
  0x9a   : > { %4154 = vmatpush3.msra.mxu1 %v6086_v62  ;;  %4174 = vmatpush3.msra.mxu0 %v6087_v52 }
  0x9b   : > { %4155 = vmatprep.subr.mxu1 %v5140_v35  ;;  %4175 = vmatprep.subr.mxu0 %v6088_v21 }
  0x9c   : > { %4119 = vmatprep.mubr.f32.mxu0 %v5323_v19  ;;  %4156 = vmatpush3.msra.mxu1 %v5140_v35 }
  0x9d   : > { %4157 = vmatprep.mubr.f32.mxu1 %v6089_v48  ;;  %4176 = vmatpush3.msra.mxu0 %v6088_v21 }
  0x9e   : > { %4120 = vmatmul.mubr.f32.gmra.mxu0 %v5329_v13  ;;  %4158 = vmatmul.mubr.f32.vlgmr.msra.gmra.mxu1 %v6090_v31 }
  0x9f   : > { %4177 = vmatprep.subr.mxu0 %v6091_v6  ;;  %4213 = vmatprep.subr.mxu1 %v4935_v3 }
  0xa0   : > { %4178 = vmatpush3.msra.mxu0 %v6091_v6  ;;  %4214 = vmatpush3.msra.mxu1 %v4935_v3  ;;  %v6094_v3 = vld [vmem:[#allocation20_spill] sm:$0xff] }
  0xa1   : > { %4179 = vmatprep.subr.mxu0 %v6092_v1  ;;  %4215 = vmatprep.subr.mxu1 %v4937_v4 }
  0xa2   : > { %4122 = vmatprep.mubr.f32.mxu0 %v5356_v44  ;;  %4160 = vmatprep.mubr.f32.mxu1 %v545_v33 }
  0xa3   : > { %4180 = vmatpush3.msra.mxu0 %v6092_v1  ;;  %4216 = vmatpush3.msra.mxu1 %v4937_v4  ;;  %v6095_v4 = vld [vmem:[#allocation21_spill] sm:$0xff] }
  0xa4   : > { %4123 = vmatmul.mubr.f32.gmra.mxu0 %v5361_v15  ;;  %4161 = vmatmul.mubr.f32.gmra.mxu1 %v555_v0 }
  0xa5   : > { %4181 = vmatprep.subr.mxu0 %v6093_v63  ;;  %4217 = vmatprep.subr.mxu1 %v4939_v5 }
  0xa6   : > { %4182 = vmatpush3.msra.mxu0 %v6093_v63  ;;  %4218 = vmatpush3.msra.mxu1 %v4939_v5  ;;  %v6096_v5 = vld [vmem:[#allocation22_spill] sm:$0xff] }
  0xa7   : > { %4183 = vmatprep.subr.mxu0 %v6094_v3  ;;  %4219 = vmatprep.subr.mxu1 %v4950_v9 }
  0xa8   : > { %4163 = vmatprep.mubr.f32.mxu1 %v565_v47  ;;  %4184 = vmatpush3.msra.mxu0 %v6094_v3  ;;  %v1387_v3 = vsel %vm1385_vm1, %v1384_v55, 0 }
  0xa9   : > { %4220 = vmatpush3.msra.mxu1 %v4950_v9  ;;  %4185 = vmatprep.subr.mxu0 %v6095_v4  ;;  %v6097_v9 = vld [vmem:[#allocation23_spill] sm:$0xff] }
  0xaa   : > { %4164 = vmatmul.mubr.f32.gmra.mxu1 %v575_v29  ;;  %4221 = vmatprep.subr.mxu1 %v4952_v10 }
  0xab   : > { %4186 = vmatpush3.msra.mxu0 %v6095_v4  ;;  %4222 = vmatpush3.msra.mxu1 %v4952_v10  ;;  %v6098_v10 = vld [vmem:[#allocation25_spill] sm:$0xff] }
  0xac   : > { %4187 = vmatprep.subr.mxu0 %v6096_v5  ;;  %4223 = vmatprep.subr.mxu1 %v4954_v11 }
  0xad   : > { %4166 = vmatprep.mubr.f32.mxu1 %v585_v57  ;;  %4188 = vmatpush3.msra.mxu0 %v6096_v5 }
  0xae   : > { %4224 = vmatpush3.msra.mxu1 %v4954_v11  ;;  %4189 = vmatprep.subr.mxu0 %v6097_v9  ;;  %v6099_v11 = vld [vmem:[#allocation26_spill] sm:$0xff] }
  0xaf   : > { %4167 = vmatmul.mubr.f32.gmra.mxu1 %v595_v46  ;;  %4225 = vmatprep.subr.mxu1 %v4969_v16 }
  0xb0   : > { %4190 = vmatpush3.msra.mxu0 %v6097_v9  ;;  %4226 = vmatpush3.msra.mxu1 %v4969_v16  ;;  %v6101_v16 = vld [vmem:[#allocation28_spill] sm:$0xff] }
  0xb1   : > { %4191 = vmatprep.subr.mxu0 %v6098_v10  ;;  %4227 = vmatprep.subr.mxu1 %v4996_v24 }
  0xb2   : > { %4192 = vmatpush3.msra.mxu0 %v6098_v10  ;;  %4228 = vmatpush3.msra.mxu1 %v4996_v24  ;;  %v4754_v24 = vmov 0.0  }
  0xb3   : > { %4193 = vmatprep.subr.mxu0 %v6099_v11  ;;  %4229 = vmatprep.subr.mxu1 %v5005_v27 }
  0xb4   : > { %4194 = vmatpush3.msra.mxu0 %v6099_v11  ;;  %4230 = vmatpush3.msra.mxu1 %v5005_v27 }
  0xb5   : > { %4195 = vmatprep.subr.mxu0 %v6100_v59  ;;  %4231 = vmatprep.subr.mxu1 %v5037_v37 }
  0xb6   : > { %4196 = vmatpush3.msra.mxu0 %v6100_v59  ;;  %4232 = vmatpush3.msra.mxu1 %v5037_v37 }
  0xb7   : > { %4197 = vmatprep.subr.mxu0 %v6101_v16  ;;  %4233 = vmatprep.subr.mxu1 %v5046_v42 }
  0xb8   : > { %4198 = vmatpush3.msra.mxu0 %v6101_v16  ;;  %4234 = vmatpush3.msra.mxu1 %v5046_v42 }
  0xb9   : > { %4199 = vmatprep.subr.mxu0 %v5239_v54  ;;  %4235 = vmatprep.subr.mxu1 %v5068_v50 }
  0xba   : > { %4200 = vmatpush3.msra.mxu0 %v5239_v54  ;;  %4201 = vmatprep.mubr.f32.mxu0 %v5175_v25 }
  0xbb   : > { %4236 = vmatpush3.msra.mxu1 %v5068_v50  ;;  %4202 = vmatmul.mubr.f32.vlgmr.msra.gmra.mxu0 %v5200_v36 }
  0xbc   : > { %4237 = vmatprep.subr.mxu1 %v5084_v56  ;;  %4204 = vmatprep.mubr.f32.mxu0 %v5267_v28 }
  0xbd   : > { %4238 = vmatpush3.msra.mxu1 %v5084_v56  ;;  %4245 = vmatprep.mubr.f32.mxu1 %v5175_v25 }
  0xbe   : > { %4239 = vmatprep.subr.mxu1 %v5090_v58  ;;  %4257 = vmatprep.subr.mxu0 %v4754_v24 }
  0xbf   : > { %4240 = vmatpush3.msra.mxu1 %v5090_v58  ;;  %4205 = vmatmul.mubr.f32.gmra.mxu0 %v5279_v53 }
  0xc0   : > { %4241 = vmatprep.subr.mxu1 %v6086_v62  ;;  %4207 = vmatprep.mubr.f32.mxu0 %v5302_v18 }
  0xc1   : > { %4242 = vmatpush3.msra.mxu1 %v6086_v62 }
  0xc2   : > { %4243 = vmatprep.subr.mxu1 %v5140_v35 }
  0xc3   : > { %4244 = vmatpush3.msra.mxu1 %v5140_v35  ;;  %4208 = vmatmul.mubr.f32.gmra.mxu0 %v5308_v22 }
  0xc4   : > { %4246 = vmatmul.mubr.f32.vlgmr.msra.gmra.mxu1 %v5200_v36  ;;  %4210 = vmatprep.mubr.f32.mxu0 %v5333_v43 }
  0xc5   : > { %4248 = vmatprep.mubr.f32.mxu1 %v5267_v28  ;;  %4276 = vmatprep.subr.mxu1 %v4754_v24 }
  0xc7   : > { %4211 = vmatmul.mubr.f32.gmra.mxu0 %v5348_v8 }
  0xc8   : > { %4249 = vmatmul.mubr.f32.gmra.mxu1 %v5279_v53  ;;  %4273 = vmatprep.mubr.msk.f32.mxu0 %vm4755_vm0, %v4754_v24 }
  0xc9   : > { %4251 = vmatprep.mubr.f32.mxu1 %v5302_v18 }
  0xcc   : > { %4252 = vmatmul.mubr.f32.gmra.mxu1 %v5308_v22 }
  0xcd   : > { %4254 = vmatprep.mubr.f32.mxu1 %v5333_v43 }
  0xd0   : > { %4255 = vmatmul.mubr.f32.gmra.mxu1 %v5348_v8 }
  0xd1   : > { %4292 = vmatprep.mubr.msk.f32.mxu1 %vm4755_vm0, %v4754_v24 }
 0x12c   : > { %v4027_v27 = vpop.f32.mrf.mxu0 }
 0x12e   : > { %v529_v37 = vpop.f32.mrf.mxu0 }
 0x134   : > { %v4071_v56 = vpop.f32.mrf.mxu1 }
 0x135   : > { %v757_v48 = vadd.f32 %v4071_v56, %v4027_v27 }
 0x136   : > { %v750_v35 = vpop.f32.mrf.mxu1 }
 0x137   : > { %v751_v11 = vadd.f32 %v750_v35, %v529_v37 }
 0x141   : > { %v4030_v42 = vpop.f32.mrf.mxu0 }
 0x143   : > { %v549_v50 = vpop.f32.mrf.mxu0 }
 0x146   : > { %v4033_v58 = vpop.f32.mrf.mxu0 }
 0x148   : > { %v4074_v25 = vpop.f32.mrf.mxu1  ;;  %v569_v36 = vpop.f32.mrf.mxu0 }
 0x149   : > { %v769_v39 = vadd.f32 %v4074_v25, %v4030_v42 }
 0x14a   : > { %v762_v54 = vpop.f32.mrf.mxu1 }
 0x14b   : > { %v763_v7 = vadd.f32 %v762_v54, %v549_v50 }
 0x14c   : > { %v4036_v28 = vpop.f32.mrf.mxu0 }
 0x14e   : > { %v4077_v53 = vpop.f32.mrf.mxu1  ;;  %v589_v14 = vpop.f32.mrf.mxu0 }
 0x14f   : > { %v781_v57 = vadd.f32 %v4077_v53, %v4033_v58 }
 0x150   : > { %v774_v32 = vpop.f32.mrf.mxu1 }
 0x151   : > { %v775_v40 = vadd.f32 %v774_v32, %v569_v36 }
 0x153   : > { %v4115_v18 = vpop.f32.mrf.mxu0 }
 0x154   : > { %v4080_v22 = vpop.f32.mrf.mxu1  ;;  %v904_v59 = vadd.f32 %v4115_v18, %v757_v48 }
 0x155   : > { %v896_v33 = vpop.f32.mrf.mxu0  ;;  %v793_v62 = vadd.f32 %v4080_v22, %v4036_v28 }
 0x156   : > { %v786_v26 = vpop.f32.mrf.mxu1  ;;  %v897_v28 = vadd.f32 %v896_v33, %v751_v11 }
 0x157   : > { %v787_v31 = vadd.f32 %v786_v26, %v589_v14 }
 0x159   : > { %v4118_v12 = vpop.f32.mrf.mxu0 }
 0x15a   : > { %v918_v52 = vadd.f32 %v4118_v12, %v769_v39 }
 0x15b   : > { %v910_v0 = vpop.f32.mrf.mxu0 }
 0x15c   : > { %v911_v4 = vadd.f32 %v910_v0, %v763_v7 }
 0x15e   : > { %v4159_v30 = vpop.f32.mrf.mxu1  ;;  %v4121_v13 = vpop.f32.mrf.mxu0 }
 0x15f   : > { %v932_v60 = vadd.f32 %v4121_v13, %v781_v57  ;;  %v1043_v27 = vadd.f32 %v4159_v30, %v904_v59 }
 0x160   : > { %v1034_v19 = vpop.f32.mrf.mxu1  ;;  %v924_v41 = vpop.f32.mrf.mxu0 }
 0x161   : > { %v925_v21 = vadd.f32 %v924_v41, %v775_v40  ;;  %v1035_v13 = vadd.f32 %v1034_v19, %v897_v28 }
 0x164   : > { %v4162_v2 = vpop.f32.mrf.mxu1  ;;  %v4124_v61 = vpop.f32.mrf.mxu0 }
 0x165   : > { %v946_v5 = vadd.f32 %v4124_v61, %v793_v62  ;;  %v1059_v9 = vadd.f32 %v4162_v2, %v918_v52  ;;  %v5538_v2 = vand.u32 4294901760, %v1387_v3 }
 0x166   : > { %v1050_v43 = vpop.f32.mrf.mxu1  ;;  %v938_v49 = vpop.f32.mrf.mxu0 }
 0x167   : > { %v939_v16 = vadd.f32 %v938_v49, %v787_v31  ;;  %v1051_v25 = vadd.f32 %v1050_v43, %v911_v4 }
 0x16a   : > { %v4165_v20 = vpop.f32.mrf.mxu1 }
 0x16b   : > { %v1075_v6 = vadd.f32 %v4165_v20, %v932_v60 }
 0x16c   : > { %v1066_v47 = vpop.f32.mrf.mxu1 }
 0x16d   : > { %v1067_v10 = vadd.f32 %v1066_v47, %v925_v21 }
 0x16f   : > { %v4168_v44 = vpop.f32.mrf.mxu1 }
 0x170   : > { %v1091_v50 = vadd.f32 %v4168_v44, %v946_v5 }
 0x171   : > { %v1082_v34 = vpop.f32.mrf.mxu1 }
 0x172   : > { %v1083_v56 = vadd.f32 %v1082_v34, %v939_v16 }
 0x17b   : > { %v4203_v8 = vpop.f32.mrf.mxu0 }
 0x17c   : > { %v1216_v37 = vadd.f32 %v4203_v8, %v1043_v27 }
 0x17d   : > { %v1209_v29 = vpop.f32.mrf.mxu0 }
 0x17e   : > { %v1210_v30 = vadd.f32 %v1209_v29, %v1035_v13 }
 0x17f   : > { %v4206_v38 = vpop.f32.mrf.mxu0 }
 0x180   : > { %v1228_v36 = vadd.f32 %v4206_v38, %v1059_v9 }
 0x181   : > { %v1221_v15 = vpop.f32.mrf.mxu0 }
 0x182   : > { %v1222_v22 = vadd.f32 %v1221_v15, %v1051_v25  ;;  %v5550_v15 = vsub.f32 %v1387_v3, %v5538_v2 }
 0x183   : > { %v4209_v23 = vpop.f32.mrf.mxu0 }
 0x184   : > { %v4247_v45 = vpop.f32.mrf.mxu1  ;;  %v1240_v42 = vadd.f32 %v4209_v23, %v1075_v6  ;;  %v1464_v60 = vand.u32 4294901760, %v5550_v15 }
 0x185   : > { %v1233_v46 = vpop.f32.mrf.mxu0  ;;  %v1345_v20 = vadd.f32 %v4247_v45, %v1216_v37 }
 0x186   : > { %v1338_v51 = vpop.f32.mrf.mxu1  ;;  %v1234_v54 = vadd.f32 %v1233_v46, %v1067_v10 }
 0x187   : > { %v4212_v1 = vpop.f32.mrf.mxu0  ;;  %v1339_v38 = vadd.f32 %v1338_v51, %v1210_v30  ;;  %v5563_v57 = vand.u32 4294901760, %v1345_v20 }
 0x188   : > { %v4250_v17 = vpop.f32.mrf.mxu1  ;;  %v1252_v26 = vadd.f32 %v4212_v1, %v1091_v50 }
 0x189   : > { %v1245_v53 = vpop.f32.mrf.mxu0  ;;  %v1357_v12 = vadd.f32 %v4250_v17, %v1228_v36  ;;  %v5575_v55 = vand.u32 4294901760, %v1339_v38  ;;  %v5589_v21 = vsub.f32 %v1345_v20, %v5563_v57 }
 0x18a   : > { %v1350_v63 = vpop.f32.mrf.mxu1  ;;  %v1246_v41 = vadd.f32 %v1245_v53, %v1083_v56  ;;  %v1926_v53 = vld [vmem:[%s6015_s4] sm:$0xff] }
 0x18b   : > { %v1351_v43 = vadd.f32 %v1350_v63, %v1222_v22  ;;  %v5542_v47 = vand.u32 4294901760, %v1357_v12  ;;  %v1465_v63 = vsub.f32 %v5550_v15, %v1464_v60  ;;  %v5605_v3 = vsub.f32 %v1339_v38, %v5575_v55 }
 0x18c   : > { %v4253_v58 = vpop.f32.mrf.mxu1  ;;  %v1533_v10 = vand.u32 4294901760, %v5589_v21 }
 0x18d   : > { %v1369_v14 = vadd.f32 %v4253_v58, %v1240_v42  ;;  %v5552_v34 = vand.u32 4294901760, %v1351_v43  ;;  %v5567_v46 = vsub.f32 %v1357_v12, %v5542_v47  ;;  %v1540_v16 = vand.u32 4294901760, %v5605_v3 }
 0x18e   : > { %v1362_v32 = vpop.f32.mrf.mxu1  ;;  %v1466_v25 = vand.u32 4294901760, %v1465_v63  ;;  %v1534_v50 = vsub.f32 %v5589_v21, %v1533_v10 }
 0x18f   : > { %v1363_v0 = vadd.f32 %v1362_v32, %v1234_v54  ;;  %v5536_v35 = vand.u32 4294901760, %v1369_v14  ;;  %v5580_v17 = vsub.f32 %v1351_v43, %v5552_v34  ;;  %v1519_v48 = vand.u32 4294901760, %v5567_v46 }
 0x190   : > { %v4256_v18 = vpop.f32.mrf.mxu1  ;;  %v1541_v54 = vsub.f32 %v5605_v3, %v1540_v16  ;;  %v1535_v27 = vand.u32 4294901760, %v1534_v50 }
 0x191   : > { %v5540_v61 = vand.u32 4294901760, %v1363_v0  ;;  %v1381_v33 = vadd.f32 %v4256_v18, %v1252_v26  ;;  %v5545_v44 = vsub.f32 %v1369_v14, %v5536_v35  ;;  %v1526_v4 = vand.u32 4294901760, %v5580_v17 }
 0x192   : > { %v1374_v49 = vpop.f32.mrf.mxu1  ;;  %v1520_v11 = vsub.f32 %v5567_v46, %v1519_v48  ;;  %v1542_v56 = vand.u32 4294901760, %v1541_v54  ;;  %v1936_v14 = vsel %vm1934_vm2, %v1926_v53, 0 }
 0x193   : > { %v5547_v19 = vand.u32 4294901760, %v1381_v33  ;;  %v1375_v8 = vadd.f32 %v1374_v49, %v1246_v41  ;;  %v5555_v23 = vsub.f32 %v1363_v0, %v5540_v61  ;;  %v1505_v51 = vand.u32 4294901760, %v5545_v44  ;;  %v1927_v41 = vld [vmem:[%s6015_s4 + $0x8] sm:$0xff]  ;;  %v1929_v49 = vld [vmem:[%s6015_s4 + $0x18] sm:$0xff] }
 0x194   : > { %v1527_v42 = vsub.f32 %v5580_v17, %v1526_v4  ;;  %v1521_v36 = vand.u32 4294901760, %v1520_v11  ;;  %v5729_v32 = vand.u32 4294901760, %v1936_v14  ;;  %v1939_v30 = vsel %vm1934_vm2, %v1927_v41, 0 }
 0x195   : > { %v5558_v29 = vsub.f32 %v1381_v33, %v5547_v19  ;;  %v5560_v45 = vand.u32 4294901760, %v1375_v8  ;;  %4258 = vmatpush3.msra.mxu0 %v5547_v19  ;;  %v1512_v7 = vand.u32 4294901760, %v5555_v23  ;;  %v1506_v31 = vsub.f32 %v5545_v44, %v1505_v51 }
 0x196   : > { %4259 = vmatprep.subr.mxu0 %v4754_v24  ;;  %v1528_v28 = vand.u32 4294901760, %v1527_v42  ;;  %v5732_v22 = vsub.f32 %v1936_v14, %v5729_v32 }
 0x197   : > { %v1491_v39 = vand.u32 4294901760, %v5558_v29  ;;  %v5572_v40 = vsub.f32 %v1375_v8, %v5560_v45  ;;  %4260 = vmatpush3.msra.mxu0 %v5560_v45  ;;  %v1513_v5 = vsub.f32 %v5555_v23, %v1512_v7  ;;  %v1507_v59 = vand.u32 4294901760, %v1506_v31 }
 0x198   : > { %4261 = vmatprep.subr.mxu0 %v4754_v24  ;;  %v1945_v8 = vsel %vm1934_vm2, %v1929_v49, 0 }
 0x199   : > { %v1492_v62 = vsub.f32 %v5558_v29, %v1491_v39  ;;  %v1498_v52 = vand.u32 4294901760, %v5572_v40  ;;  %4262 = vmatpush3.msra.mxu0 %v5536_v35  ;;  %v1514_v58 = vand.u32 4294901760, %v1513_v5 }
 0x19a   : > { %4263 = vmatprep.subr.mxu0 %v4754_v24 }
 0x19b   : > { %v1499_v6 = vsub.f32 %v5572_v40, %v1498_v52  ;;  %4264 = vmatpush3.msra.mxu0 %v5540_v61  ;;  %v1493_v1 = vand.u32 4294901760, %v1492_v62 }
 0x19c   : > { %4265 = vmatprep.subr.mxu0 %v4754_v24 }
 0x19d   : > { %4266 = vmatpush3.msra.mxu0 %v5542_v47  ;;  %4277 = vmatpush3.msra.mxu1 %v1493_v1  ;;  %v1500_v9 = vand.u32 4294901760, %v1499_v6 }
 0x19e   : > { %4267 = vmatprep.subr.mxu0 %v4754_v24  ;;  %4278 = vmatprep.subr.mxu1 %v4754_v24 }
 0x19f   : > { %4268 = vmatpush3.msra.mxu0 %v5552_v34  ;;  %4279 = vmatpush3.msra.mxu1 %v1500_v9 }
 0x1a0   : > { %4269 = vmatprep.subr.mxu0 %v4754_v24  ;;  %4280 = vmatprep.subr.mxu1 %v4754_v24 }
 0x1a1   : > { %4270 = vmatpush3.msra.mxu0 %v5563_v57  ;;  %4281 = vmatpush3.msra.mxu1 %v1507_v59 }
 0x1a2   : > { %4271 = vmatprep.subr.mxu0 %v4754_v24  ;;  %4282 = vmatprep.subr.mxu1 %v4754_v24 }
 0x1a3   : > { %4272 = vmatpush3.msra.mxu0 %v5575_v55  ;;  %4283 = vmatpush3.msra.mxu1 %v1514_v58 }
 0x1a4   : > { %4284 = vmatprep.subr.mxu1 %v4754_v24  ;;  %4295 = vmatprep.subr.mxu0 %v4754_v24 }
 0x1a5   : > { %4274 = vmatmul.mubr.f32.vlgmr.msra.gmra.mxu0 %v1466_v25  ;;  %4285 = vmatpush3.msra.mxu1 %v1521_v36 }
 0x1a6   : > { %4296 = vmatpush3.msra.mxu0 %v5558_v29  ;;  %4286 = vmatprep.subr.mxu1 %v4754_v24  ;;  %v1932_v29 = vld [vmem:[%s6015_s4 + $0x30] sm:$0xff] }
 0x1a7   : > { %4297 = vmatprep.subr.mxu0 %v4754_v24  ;;  %4287 = vmatpush3.msra.mxu1 %v1528_v28 }
 0x1a8   : > { %4298 = vmatpush3.msra.mxu0 %v5572_v40  ;;  %4288 = vmatprep.subr.mxu1 %v4754_v24 }
 0x1a9   : > { %4299 = vmatprep.subr.mxu0 %v4754_v24  ;;  %4289 = vmatpush3.msra.mxu1 %v1535_v27 }
 0x1aa   : > { %4300 = vmatpush3.msra.mxu0 %v5545_v44  ;;  %4290 = vmatprep.subr.mxu1 %v4754_v24  ;;  %v1930_v44 = vld [vmem:[%s6015_s4 + $0x20] sm:$0xff] }
 0x1ab   : > { %4301 = vmatprep.subr.mxu0 %v4754_v24  ;;  %4291 = vmatpush3.msra.mxu1 %v1542_v56  ;;  %v1948_v38 = vsel %vm1934_vm2, %v1930_v44, 0 }
 0x1ac   : > { %4302 = vmatpush3.msra.mxu0 %v5555_v23  ;;  %4293 = vmatmul.mubr.f32.vlgmr.msra.gmra.mxu1 %v5538_v2 }
 0x1ad   : > { %4303 = vmatprep.subr.mxu0 %v4754_v24  ;;  %4314 = vmatprep.subr.mxu1 %v4754_v24 }
 0x1ae   : > { %4304 = vmatpush3.msra.mxu0 %v5567_v46  ;;  %4315 = vmatpush3.msra.mxu1 %v5547_v19 }
 0x1af   : > { %4305 = vmatprep.subr.mxu0 %v4754_v24  ;;  %4316 = vmatprep.subr.mxu1 %v4754_v24 }
 0x1b0   : > { %4306 = vmatpush3.msra.mxu0 %v5580_v17  ;;  %4317 = vmatpush3.msra.mxu1 %v5560_v45 }
 0x1b1   : > { %4307 = vmatprep.subr.mxu0 %v4754_v24  ;;  %4318 = vmatprep.subr.mxu1 %v4754_v24 }
 0x1b2   : > { %4308 = vmatpush3.msra.mxu0 %v5589_v21  ;;  %4319 = vmatpush3.msra.mxu1 %v5536_v35 }
 0x1b3   : > { %4309 = vmatprep.subr.mxu0 %v4754_v24  ;;  %4320 = vmatprep.subr.mxu1 %v4754_v24 }
 0x1b4   : > { %4310 = vmatpush3.msra.mxu0 %v5605_v3  ;;  %4311 = vmatprep.mubr.msk.f32.mxu0 %vm4755_vm0, %v4754_v24 }
 0x1b5   : > { %4321 = vmatpush3.msra.mxu1 %v5540_v61  ;;  %4312 = vmatmul.mubr.f32.vlgmr.msra.gmra.mxu0 %v5550_v15  ;;  %v1931_v15 = vld [vmem:[%s6015_s4 + $0x28] sm:$0xff] }
 0x1b6   : > { %4322 = vmatprep.subr.mxu1 %v4754_v24  ;;  %4333 = vmatprep.subr.mxu0 %v4754_v24  ;;  %v1951_v40 = vsel %vm1934_vm2, %v1931_v15, 0 }
 0x1b7   : > { %4323 = vmatpush3.msra.mxu1 %v5542_v47  ;;  %4334 = vmatpush3.msra.mxu0 %v1491_v39  ;;  %v5773_v39 = vand.u32 4294901760, %v1948_v38  ;;  %v5785_v21 = vand.u32 4294901760, %v1951_v40 }
 0x1b8   : > { %4324 = vmatprep.subr.mxu1 %v4754_v24  ;;  %4335 = vmatprep.subr.mxu0 %v4754_v24 }
 0x1b9   : > { %4325 = vmatpush3.msra.mxu1 %v5552_v34  ;;  %4336 = vmatpush3.msra.mxu0 %v1498_v52  ;;  %v5788_v31 = vsub.f32 %v1948_v38, %v5773_v39  ;;  %v5798_v9 = vsub.f32 %v1951_v40, %v5785_v21 }
 0x1ba   : > { %4326 = vmatprep.subr.mxu1 %v4754_v24  ;;  %4337 = vmatprep.subr.mxu0 %v4754_v24 }
 0x1bb   : > { %4327 = vmatpush3.msra.mxu1 %v5563_v57  ;;  %4338 = vmatpush3.msra.mxu0 %v1505_v51  ;;  %v2081_v28 = vand.u32 4294901760, %v5798_v9 }
 0x1bc   : > { %4328 = vmatprep.subr.mxu1 %v4754_v24  ;;  %4339 = vmatprep.subr.mxu0 %v4754_v24 }
 0x1bd   : > { %4329 = vmatpush3.msra.mxu1 %v5575_v55  ;;  %4330 = vmatprep.mubr.msk.f32.mxu1 %vm4755_vm0, %v4754_v24 }
 0x1be   : > { %4340 = vmatpush3.msra.mxu0 %v1512_v7  ;;  %4331 = vmatmul.mubr.f32.vlgmr.msra.gmra.mxu1 %v1464_v60  ;;  %v1933_v60 = vld [vmem:[%s6015_s4 + $0x38] sm:$0xff] }
 0x1bf   : > { %4341 = vmatprep.subr.mxu0 %v4754_v24  ;;  %4352 = vmatprep.subr.mxu1 %v4754_v24  ;;  %v1957_v1 = vsel %vm1934_vm2, %v1933_v60, 0 }
 0x1c0   : > { %4342 = vmatpush3.msra.mxu0 %v1519_v48  ;;  %4353 = vmatpush3.msra.mxu1 %v5547_v19 }
 0x1c1   : > { %4343 = vmatprep.subr.mxu0 %v4754_v24  ;;  %4354 = vmatprep.subr.mxu1 %v4754_v24 }
 0x1c2   : > { %4344 = vmatpush3.msra.mxu0 %v1526_v4  ;;  %4355 = vmatpush3.msra.mxu1 %v5560_v45 }
 0x1c3   : > { %4345 = vmatprep.subr.mxu0 %v4754_v24  ;;  %4356 = vmatprep.subr.mxu1 %v4754_v24 }
 0x1c4   : > { %4346 = vmatpush3.msra.mxu0 %v1533_v10  ;;  %4357 = vmatpush3.msra.mxu1 %v5536_v35  ;;  %v5800_v10 = vand.u32 4294901760, %v1957_v1 }
 0x1c5   : > { %4347 = vmatprep.subr.mxu0 %v4754_v24  ;;  %4358 = vmatprep.subr.mxu1 %v4754_v24 }
 0x1c6   : > { %4348 = vmatpush3.msra.mxu0 %v1540_v16  ;;  %4349 = vmatprep.mubr.msk.f32.mxu0 %vm4755_vm0, %v4754_v24  ;;  %v2071_v16 = vand.u32 4294901760, %v5788_v31  ;;  %v2100_v27 = vsub.f32 %v1957_v1, %v5800_v10 }
 0x1c7   : > { %4359 = vmatpush3.msra.mxu1 %v5540_v61  ;;  %4350 = vmatmul.mubr.f32.vlgmr.msra.gmra.mxu0 %v5538_v2  ;;  %v1928_v61 = vld [vmem:[%s6015_s4 + $0x10] sm:$0xff] }
 0x1c8   : > { %4360 = vmatprep.subr.mxu1 %v4754_v24  ;;  %4368 = vmatprep.mubr.msk.f32.mxu1 %vm4755_vm0, %v4754_v24  ;;  %v1942_v20 = vsel %vm1934_vm2, %v1928_v61, 0  ;;  %v2072_v53 = vsub.f32 %v5788_v31, %v2071_v16 }
 0x1c9   : > { %4361 = vmatpush3.msra.mxu1 %v5542_v47  ;;  %v5750_v47 = vand.u32 4294901760, %v1939_v30  ;;  %v5755_v19 = vand.u32 4294901760, %v1942_v20 }
 0x1ca   : > { %4362 = vmatprep.subr.mxu1 %v4754_v24 }
 0x1cb   : > { %4363 = vmatpush3.msra.mxu1 %v5552_v34  ;;  %v5763_v23 = vsub.f32 %v1939_v30, %v5750_v47  ;;  %v5769_v45 = vsub.f32 %v1942_v20, %v5755_v19 }
 0x1cc   : > { %4364 = vmatprep.subr.mxu1 %v4754_v24 }
 0x1cd   : > { %4365 = vmatpush3.msra.mxu1 %v5563_v57  ;;  %v5771_v57 = vand.u32 4294901760, %v1945_v8  ;;  %v2041_v7 = vand.u32 4294901760, %v5763_v23  ;;  %v2051_v62 = vand.u32 4294901760, %v5769_v45 }
 0x1ce   : > { %4366 = vmatprep.subr.mxu1 %v4754_v24  ;;  %v2031_v24 = vand.u32 4294901760, %v5732_v22 }
 0x1cf   : > { %4367 = vmatpush3.msra.mxu1 %v5575_v55  ;;  %v1954_v55 = vsel %vm1934_vm2, %v1932_v29, 0  ;;  %v5783_v52 = vsub.f32 %v1945_v8, %v5771_v57  ;;  %v2042_v3 = vsub.f32 %v5763_v23, %v2041_v7  ;;  %v2052_v59 = vsub.f32 %v5769_v45, %v2051_v62 }
 0x1d0   : > { %4369 = vmatmul.mubr.f32.vlgmr.msra.gmra.mxu1 %v5538_v2  ;;  %v2032_v26 = vsub.f32 %v5732_v22, %v2031_v24  ;;  %v5790_v6 = vand.u32 4294901760, %v1954_v55 }
 0x1d1   : > { %4387 = vmatprep.mubr.f32.mxu1 %v5729_v32  ;;  %v2061_v5 = vand.u32 4294901760, %v5783_v52  ;;  %v2043_v50 = vand.u32 4294901760, %v2042_v3  ;;  %v2053_v56 = vand.u32 4294901760, %v2052_v59 }
 0x1d2   : > { %v2033_v12 = vand.u32 4294901760, %v2032_v26  ;;  %v5807_v42 = vsub.f32 %v1954_v55, %v5790_v6 }
 0x1d3   : > { %v2062_v54 = vsub.f32 %v5783_v52, %v2061_v5 }
 0x1d4   : > { %4373 = vmatprep.mubr.f32.mxu0 %v2033_v12  ;;  %v2091_v14 = vand.u32 4294901760, %v5807_v42 }
 0x265   : > { %v1468_v0 = vpop.f32.mrf.mxu0 }
 0x267   : > { %v4275_v13 = vpop.f32.mrf.mxu0 }
 0x268   : > { %v2082_v13 = vsub.f32 %v5798_v9, %v2081_v28 }
 0x26c   : > { %v1579_v37 = vpop.f32.mrf.mxu1 }
 0x26d   : > { %v1580_v46 = vadd.f32 %v1579_v37, %v1468_v0  ;;  %v2063_v0 = vand.u32 4294901760, %v2062_v54  ;;  %v2101_v37 = vand.u32 4294901760, %v2100_v27 }
 0x26e   : > { %v4294_v35 = vpop.f32.mrf.mxu1 }
 0x26f   : > { %v2073_v35 = vand.u32 4294901760, %v2072_v53  ;;  %v2102_v61 = vsub.f32 %v2100_v27, %v2101_v37 }
 0x271   : > { %v2103_v30 = vand.u32 4294901760, %v2102_v61 }
 0x275   : > { %v1667_v18 = vpop.f32.mrf.mxu0 }
 0x276   : > { %v1668_v17 = vadd.f32 %v1667_v18, %v1580_v46  ;;  %v2092_v18 = vsub.f32 %v5807_v42, %v2091_v14 }
 0x277   : > { %v4313_v2 = vpop.f32.mrf.mxu0 }
 0x27e   : > { %v1748_v43 = vpop.f32.mrf.mxu1 }
 0x27f   : > { %v1749_v48 = vadd.f32 %v1748_v43, %v1668_v17  ;;  %v2083_v43 = vand.u32 4294901760, %v2082_v13 }
 0x280   : > { %v4332_v33 = vpop.f32.mrf.mxu1 }
 0x281   : > { %v2093_v33 = vand.u32 4294901760, %v2092_v18 }
 0x287   : > { %v1843_v34 = vpop.f32.mrf.mxu0 }
 0x288   : > { %v1844_v63 = vadd.f32 %v1843_v34, %v1749_v48 }
 0x289   : > { %v4351_v51 = vpop.f32.mrf.mxu0 }
 0x290   : > { %v1922_v4 = vpop.f32.mrf.mxu1 }
 0x291   : > { %v1923_v11 = vadd.f32 %v1922_v4, %v1844_v63 }
 0x292   : > { %v4370_v58 = vpop.f32.mrf.mxu1 }
 0x293   : > { %v1961_v25 = vsel %vm1959_vm3, %v1923_v11, 0 }
 0x294   : > { %v1994_v36 = vand.u32 4294901760, %v1961_v25 }
 0x296   : > { %v2141_v26 = vsub.f32 %v1961_v25, %v1994_v36  ;;  %4371 = vmatprep.subr.mxu0 %v1994_v36 }
 0x297   : > { %4372 = vmatpush3.msra.mxu0 %v1994_v36 }
 0x298   : > { %4374 = vmatmul.mubr.f32.vlgmr.msra.gmra.mxu0 %v2043_v50  ;;  %4399 = vmatprep.subr.mxu0 %v2141_v26  ;;  %v2142_v12 = vand.u32 4294901760, %v2141_v26 }
 0x299   : > { %4400 = vmatpush3.msra.mxu0 %v2141_v26  ;;  %4376 = vmatprep.mubr.f32.mxu0 %v2053_v56 }
 0x29a   : > { %4427 = vmatprep.subr.mxu0 %v2142_v12  ;;  %v2143_v2 = vsub.f32 %v2141_v26, %v2142_v12 }
 0x29c   : > { %4377 = vmatmul.mubr.f32.gmra.mxu0 %v2063_v0  ;;  %v2144_v41 = vand.u32 4294901760, %v2143_v2 }
 0x29d   : > { %4379 = vmatprep.mubr.f32.mxu0 %v2073_v35 }
 0x29e   : > { %4385 = vmatprep.subr.mxu1 %v2144_v41 }
 0x29f   : > { %4386 = vmatpush3.msra.mxu1 %v2144_v41 }
 0x2a0   : > { %4380 = vmatmul.mubr.f32.gmra.mxu0 %v2083_v43  ;;  %4388 = vmatmul.mubr.f32.vlgmr.msra.gmra.mxu1 %v5750_v47 }
 0x2a1   : > { %4413 = vmatprep.subr.mxu1 %v1994_v36  ;;  %4382 = vmatprep.mubr.f32.mxu0 %v2093_v33 }
 0x2a2   : > { %4414 = vmatpush3.msra.mxu1 %v1994_v36  ;;  %4390 = vmatprep.mubr.f32.mxu1 %v5755_v19 }
 0x2a3   : > { %4441 = vmatprep.subr.mxu1 %v1994_v36 }
 0x2a4   : > { %4383 = vmatmul.mubr.f32.gmra.mxu0 %v2103_v30  ;;  %4391 = vmatmul.mubr.f32.gmra.mxu1 %v5771_v57 }
 0x2a5   : > { %4393 = vmatprep.mubr.f32.mxu1 %v5773_v39  ;;  %4401 = vmatprep.mubr.f32.mxu0 %v5732_v22 }
 0x2a8   : > { %4394 = vmatmul.mubr.f32.gmra.mxu1 %v5785_v21  ;;  %4402 = vmatmul.mubr.f32.vlgmr.msra.gmra.mxu0 %v5763_v23 }
 0x2a9   : > { %4428 = vmatpush3.msra.mxu0 %v2142_v12  ;;  %4396 = vmatprep.mubr.f32.mxu1 %v5790_v6 }
 0x2aa   : > { %4404 = vmatprep.mubr.f32.mxu0 %v5769_v45 }
 0x2ac   : > { %4397 = vmatmul.mubr.f32.gmra.mxu1 %v5800_v10  ;;  %4405 = vmatmul.mubr.f32.gmra.mxu0 %v5783_v52 }
 0x2ad   : > { %4407 = vmatprep.mubr.f32.mxu0 %v5788_v31  ;;  %4415 = vmatprep.mubr.f32.mxu1 %v2031_v24 }
 0x2b0   : > { %4408 = vmatmul.mubr.f32.gmra.mxu0 %v5798_v9  ;;  %4416 = vmatmul.mubr.f32.vlgmr.msra.gmra.mxu1 %v2041_v7 }
 0x2b1   : > { %4442 = vmatpush3.msra.mxu1 %v1994_v36  ;;  %4410 = vmatprep.mubr.f32.mxu0 %v5807_v42 }
 0x2b2   : > { %4418 = vmatprep.mubr.f32.mxu1 %v2051_v62 }
 0x2b4   : > { %4411 = vmatmul.mubr.f32.gmra.mxu0 %v2100_v27  ;;  %4419 = vmatmul.mubr.f32.gmra.mxu1 %v2061_v5 }
 0x2b5   : > { %4421 = vmatprep.mubr.f32.mxu1 %v2071_v16  ;;  %4429 = vmatprep.mubr.f32.mxu0 %v5729_v32 }
 0x2b8   : > { %4422 = vmatmul.mubr.f32.gmra.mxu1 %v2081_v28  ;;  %4430 = vmatmul.mubr.f32.vlgmr.msra.gmra.mxu0 %v5750_v47 }
 0x2b9   : > { %4424 = vmatprep.mubr.f32.mxu1 %v2091_v14  ;;  %4432 = vmatprep.mubr.f32.mxu0 %v5755_v19 }
 0x2bc   : > { %4425 = vmatmul.mubr.f32.gmra.mxu1 %v2101_v37  ;;  %4433 = vmatmul.mubr.f32.gmra.mxu0 %v5771_v57 }
 0x2bd   : > { %4435 = vmatprep.mubr.f32.mxu0 %v5773_v39  ;;  %4443 = vmatprep.mubr.f32.mxu1 %v5729_v32  ;;  %v2710_v32 = vld [vmem:[%s6016_s5] sm:$0xff] }
 0x2be   : > { %v5859_v22 = vand.u32 4294901760, %v2710_v32 }
 0x2c0   : > { %4436 = vmatmul.mubr.f32.gmra.mxu0 %v5785_v21  ;;  %4444 = vmatmul.mubr.f32.vlgmr.msra.gmra.mxu1 %v5750_v47  ;;  %v5863_v24 = vsub.f32 %v2710_v32, %v5859_v22 }
 0x2c1   : > { %4438 = vmatprep.mubr.f32.mxu0 %v5790_v6  ;;  %4446 = vmatprep.mubr.f32.mxu1 %v5755_v19 }
 0x2c2   : > { %4455 = vmatprep.subr.mxu0 %v5859_v22  ;;  %v5867_v20 = vand.u32 4294901760, %v5863_v24 }
 0x2c3   : > { %4456 = vmatpush3.msra.mxu0 %v5859_v22 }
 0x2c4   : > { %4439 = vmatmul.mubr.f32.gmra.mxu0 %v5800_v10  ;;  %4447 = vmatmul.mubr.f32.gmra.mxu1 %v5771_v57  ;;  %v2916_v49 = vsub.f32 %v5863_v24, %v5867_v20 }
 0x2c5   : > { %4449 = vmatprep.mubr.f32.mxu1 %v5773_v39  ;;  %4483 = vmatprep.subr.mxu0 %v5863_v24 }
 0x2c6   : > { %v2917_v47 = vand.u32 4294901760, %v2916_v49 }
 0x2c8   : > { %4450 = vmatmul.mubr.f32.gmra.mxu1 %v5785_v21  ;;  %4469 = vmatprep.subr.mxu1 %v2917_v47 }
 0x2c9   : > { %4452 = vmatprep.mubr.f32.mxu1 %v5790_v6  ;;  %4470 = vmatpush3.msra.mxu1 %v2917_v47 }
 0x2ca   : > { %4497 = vmatprep.subr.mxu1 %v5859_v22 }
 0x2cc   : > { %4453 = vmatmul.mubr.f32.gmra.mxu1 %v5800_v10 }
 0x358   : > { %v4375_v44 = vpop.f32.mrf.mxu0 }
 0x35a   : > { %v2035_v19 = vpop.f32.mrf.mxu0 }
 0x35c   : > { %v4378_v8 = vpop.f32.mrf.mxu0 }
 0x35e   : > { %v2055_v38 = vpop.f32.mrf.mxu0 }
 0x360   : > { %v4381_v15 = vpop.f32.mrf.mxu0  ;;  %v4389_v34 = vpop.f32.mrf.mxu1 }
 0x361   : > { %v2188_v10 = vadd.f32 %v4389_v34, %v4375_v44 }
 0x362   : > { %v2075_v23 = vpop.f32.mrf.mxu0  ;;  %v2181_v29 = vpop.f32.mrf.mxu1 }
 0x363   : > { %v2182_v16 = vadd.f32 %v2181_v29, %v2035_v19 }
 0x364   : > { %v4384_v45 = vpop.f32.mrf.mxu0  ;;  %v4392_v57 = vpop.f32.mrf.mxu1 }
 0x365   : > { %v2200_v50 = vadd.f32 %v4392_v57, %v4378_v8 }
 0x366   : > { %v2095_v46 = vpop.f32.mrf.mxu0  ;;  %v2193_v51 = vpop.f32.mrf.mxu1 }
 0x367   : > { %v2194_v56 = vadd.f32 %v2193_v51, %v2055_v38 }
 0x368   : > { %v4395_v39 = vpop.f32.mrf.mxu1  ;;  %v4403_v40 = vpop.f32.mrf.mxu0 }
 0x369   : > { %v2305_v42 = vadd.f32 %v4403_v40, %v2188_v10  ;;  %v2212_v12 = vadd.f32 %v4395_v39, %v4381_v15 }
 0x36a   : > { %v2205_v55 = vpop.f32.mrf.mxu1  ;;  %v2297_v60 = vpop.f32.mrf.mxu0 }
 0x36b   : > { %v2298_v36 = vadd.f32 %v2297_v60, %v2182_v16  ;;  %v2206_v41 = vadd.f32 %v2205_v55, %v2075_v23 }
 0x36c   : > { %v4398_v17 = vpop.f32.mrf.mxu1  ;;  %v4406_v7 = vpop.f32.mrf.mxu0 }
 0x36d   : > { %v2319_v53 = vadd.f32 %v4406_v7, %v2200_v50  ;;  %v2224_v44 = vadd.f32 %v4398_v17, %v4384_v45 }
 0x36e   : > { %v2217_v62 = vpop.f32.mrf.mxu1  ;;  %v2311_v52 = vpop.f32.mrf.mxu0 }
 0x36f   : > { %v2312_v37 = vadd.f32 %v2311_v52, %v2194_v56  ;;  %v2218_v51 = vadd.f32 %v2217_v62, %v2095_v46 }
 0x370   : > { %v4409_v21 = vpop.f32.mrf.mxu0  ;;  %v4417_v48 = vpop.f32.mrf.mxu1 }
 0x371   : > { %v2429_v54 = vadd.f32 %v4417_v48, %v2305_v42  ;;  %v2333_v43 = vadd.f32 %v4409_v21, %v2212_v12 }
 0x372   : > { %v2325_v31 = vpop.f32.mrf.mxu0  ;;  %v2420_v6 = vpop.f32.mrf.mxu1 }
 0x373   : > { %v2421_v14 = vadd.f32 %v2420_v6, %v2298_v36  ;;  %v2326_v19 = vadd.f32 %v2325_v31, %v2206_v41 }
 0x374   : > { %v4412_v1 = vpop.f32.mrf.mxu0  ;;  %v4420_v63 = vpop.f32.mrf.mxu1 }
 0x375   : > { %v2445_v35 = vadd.f32 %v4420_v63, %v2319_v53  ;;  %v2347_v23 = vadd.f32 %v4412_v1, %v2224_v44 }
 0x376   : > { %v2339_v3 = vpop.f32.mrf.mxu0  ;;  %v2436_v4 = vpop.f32.mrf.mxu1 }
 0x377   : > { %v2437_v30 = vadd.f32 %v2436_v4, %v2312_v37  ;;  %v2340_v21 = vadd.f32 %v2339_v3, %v2218_v51 }
 0x378   : > { %v4423_v5 = vpop.f32.mrf.mxu1  ;;  %v4431_v9 = vpop.f32.mrf.mxu0 }
 0x379   : > { %v2557_v26 = vadd.f32 %v4431_v9, %v2429_v54  ;;  %v2461_v15 = vadd.f32 %v4423_v5, %v2333_v43 }
 0x37a   : > { %v2452_v11 = vpop.f32.mrf.mxu1  ;;  %v2550_v59 = vpop.f32.mrf.mxu0 }
 0x37b   : > { %v2551_v18 = vadd.f32 %v2550_v59, %v2421_v14  ;;  %v2453_v7 = vadd.f32 %v2452_v11, %v2326_v19 }
 0x37c   : > { %v4426_v58 = vpop.f32.mrf.mxu1  ;;  %v4434_v25 = vpop.f32.mrf.mxu0 }
 0x37d   : > { %v2569_v32 = vadd.f32 %v4434_v25, %v2445_v35  ;;  %v2477_v6 = vadd.f32 %v4426_v58, %v2347_v23 }
 0x37e   : > { %v2468_v28 = vpop.f32.mrf.mxu1  ;;  %v2562_v27 = vpop.f32.mrf.mxu0 }
 0x37f   : > { %v2563_v34 = vadd.f32 %v2562_v27, %v2437_v30  ;;  %v2469_v5 = vadd.f32 %v2468_v28, %v2340_v21 }
 0x380   : > { %v4437_v0 = vpop.f32.mrf.mxu0  ;;  %v4445_v13 = vpop.f32.mrf.mxu1 }
 0x381   : > { %v2671_v2 = vadd.f32 %v4445_v13, %v2557_v26  ;;  %v2581_v45 = vadd.f32 %v4437_v0, %v2461_v15 }
 0x382   : > { %v2574_v61 = vpop.f32.mrf.mxu0  ;;  %v2664_v33 = vpop.f32.mrf.mxu1 }
 0x383   : > { %v2716_v49 = vsel %vm2711_vm4, %v2671_v2, 0  ;;  %v2665_v47 = vadd.f32 %v2664_v33, %v2551_v18  ;;  %v2575_v1 = vadd.f32 %v2574_v61, %v2453_v7 }
 0x384   : > { %v5874_v8 = vand.u32 4294901760, %v2716_v49  ;;  %v4448_v38 = vpop.f32.mrf.mxu1  ;;  %v4440_v55 = vpop.f32.mrf.mxu0 }
 0x385   : > { %v2713_v29 = vsel %vm2711_vm4, %v2665_v47, 0  ;;  %v2683_v57 = vadd.f32 %v4448_v38, %v2569_v32  ;;  %v2593_v42 = vadd.f32 %v4440_v55, %v2477_v6 }
 0x386   : > { %v5878_v39 = vsub.f32 %v2716_v49, %v5874_v8  ;;  %v5880_v40 = vand.u32 4294901760, %v2713_v29  ;;  %v2676_v60 = vpop.f32.mrf.mxu1  ;;  %v2586_v9 = vpop.f32.mrf.mxu0 }
 0x387   : > { %v2722_v17 = vsel %vm2711_vm4, %v2683_v57, 0  ;;  %v2677_v52 = vadd.f32 %v2676_v60, %v2563_v34  ;;  %v2587_v27 = vadd.f32 %v2586_v9, %v2469_v5 }
 0x388   : > { %v2814_v48 = vand.u32 4294901760, %v5878_v39  ;;  %v5885_v31 = vsub.f32 %v2713_v29, %v5880_v40  ;;  %v5887_v46 = vand.u32 4294901760, %v2722_v17  ;;  %v4451_v62 = vpop.f32.mrf.mxu1  ;;  %4471 = vmatprep.mubr.f32.mxu1 %v5880_v40 }
 0x389   : > { %v2719_v63 = vsel %vm2711_vm4, %v2677_v52, 0  ;;  %v2695_v4 = vadd.f32 %v4451_v62, %v2581_v45  ;;  %4472 = vmatmul.mubr.f32.vlgmr.msra.gmra.mxu1 %v5874_v8 }
 0x38a   : > { %v5893_v3 = vsub.f32 %v2722_v17, %v5887_v46  ;;  %v5895_v10 = vand.u32 4294901760, %v2719_v63  ;;  %v2688_v11 = vpop.f32.mrf.mxu1  ;;  %v2804_v59 = vand.u32 4294901760, %v5885_v31  ;;  %4498 = vmatpush3.msra.mxu1 %v5859_v22  ;;  %v2815_v16 = vsub.f32 %v5878_v39, %v2814_v48 }
 0x38b   : > { %v2728_v58 = vsel %vm2711_vm4, %v2695_v4, 0  ;;  %v2689_v25 = vadd.f32 %v2688_v11, %v2575_v1  ;;  %4525 = vmatprep.subr.mxu1 %v5859_v22 }
 0x38c   : > { %v2823_v50 = vsub.f32 %v2719_v63, %v5895_v10  ;;  %v5905_v36 = vand.u32 4294901760, %v2728_v58  ;;  %v4454_v54 = vpop.f32.mrf.mxu1  ;;  %4474 = vmatprep.mubr.f32.mxu1 %v5895_v10  ;;  %v2805_v28 = vsub.f32 %v5885_v31, %v2804_v59  ;;  %v2834_v14 = vand.u32 4294901760, %v5893_v3 }
 0x38d   : > { %v2725_v56 = vsel %vm2711_vm4, %v2689_v25, 0  ;;  %v2707_v53 = vadd.f32 %v4454_v54, %v2593_v42  ;;  %4475 = vmatmul.mubr.f32.gmra.mxu1 %v5887_v46  ;;  %v2816_v35 = vand.u32 4294901760, %v2815_v16 }
 0x38e   : > { %v2853_v26 = vsub.f32 %v2728_v58, %v5905_v36  ;;  %v5913_v12 = vand.u32 4294901760, %v2725_v56  ;;  %v2700_v0 = vpop.f32.mrf.mxu1  ;;  %v2806_v13 = vand.u32 4294901760, %v2805_v28  ;;  %v2824_v37 = vand.u32 4294901760, %v2823_v50 }
 0x38f   : > { %v2734_v18 = vsel %vm2711_vm4, %v2707_v53, 0  ;;  %v2701_v2 = vadd.f32 %v2700_v0, %v2587_v27  ;;  %v2835_v41 = vsub.f32 %v5893_v3, %v2834_v14 }
 0x390   : > { %v2843_v43 = vsub.f32 %v2725_v56, %v5913_v12  ;;  %v5918_v61 = vand.u32 4294901760, %v2734_v18  ;;  %4457 = vmatprep.mubr.f32.mxu0 %v2806_v13  ;;  %4477 = vmatprep.mubr.f32.mxu1 %v5913_v12  ;;  %v2825_v33 = vsub.f32 %v2823_v50, %v2824_v37  ;;  %v2854_v30 = vand.u32 4294901760, %v2853_v26 }
 0x391   : > { %v2731_v32 = vsel %vm2711_vm4, %v2701_v2, 0  ;;  %4458 = vmatmul.mubr.f32.vlgmr.msra.gmra.mxu0 %v2816_v35  ;;  %4478 = vmatmul.mubr.f32.gmra.mxu1 %v5905_v36  ;;  %v2836_v38 = vand.u32 4294901760, %v2835_v41 }
 0x392   : > { %v2873_v49 = vsub.f32 %v2734_v18, %v5918_v61  ;;  %v2862_v47 = vand.u32 4294901760, %v2731_v32  ;;  %v2826_v44 = vand.u32 4294901760, %v2825_v33  ;;  %4484 = vmatpush3.msra.mxu0 %v5863_v24  ;;  %v2844_v19 = vand.u32 4294901760, %v2843_v43 }
 0x393   : > { %v2855_v15 = vsub.f32 %v2853_v26, %v2854_v30  ;;  %4511 = vmatprep.subr.mxu0 %v5867_v20 }
 0x394   : > { %v2863_v34 = vsub.f32 %v2731_v32, %v2862_v47  ;;  %4460 = vmatprep.mubr.f32.mxu0 %v2826_v44  ;;  %4480 = vmatprep.mubr.f32.mxu1 %v2862_v47  ;;  %v2845_v29 = vsub.f32 %v2843_v43, %v2844_v19  ;;  %v2874_v57 = vand.u32 4294901760, %v2873_v49 }
 0x395   : > { %4461 = vmatmul.mubr.f32.gmra.mxu0 %v2836_v38  ;;  %4481 = vmatmul.mubr.f32.gmra.mxu1 %v5918_v61  ;;  %v2856_v55 = vand.u32 4294901760, %v2855_v15 }
 0x396   : > { %4499 = vmatprep.mubr.f32.mxu1 %v2804_v59  ;;  %v2846_v51 = vand.u32 4294901760, %v2845_v29  ;;  %v2864_v23 = vand.u32 4294901760, %v2863_v34  ;;  %v2875_v60 = vsub.f32 %v2873_v49, %v2874_v57 }
 0x398   : > { %4463 = vmatprep.mubr.f32.mxu0 %v2846_v51  ;;  %v2865_v24 = vsub.f32 %v2863_v34, %v2864_v23  ;;  %v2876_v45 = vand.u32 4294901760, %v2875_v60 }
 0x399   : > { %4464 = vmatmul.mubr.f32.gmra.mxu0 %v2856_v55  ;;  %4500 = vmatmul.mubr.f32.vlgmr.msra.gmra.mxu1 %v2814_v48 }
 0x39a   : > { %4502 = vmatprep.mubr.f32.mxu1 %v2824_v37  ;;  %v2866_v7 = vand.u32 4294901760, %v2865_v24  ;;  %4526 = vmatpush3.msra.mxu1 %v5859_v22 }
 0x39c   : > { %4466 = vmatprep.mubr.f32.mxu0 %v2866_v7 }
 0x39d   : > { %4467 = vmatmul.mubr.f32.gmra.mxu0 %v2876_v45  ;;  %4503 = vmatmul.mubr.f32.gmra.mxu1 %v2834_v14 }
 0x39e   : > { %4485 = vmatprep.mubr.f32.mxu0 %v5885_v31  ;;  %4505 = vmatprep.mubr.f32.mxu1 %v2844_v19 }
 0x3a1   : > { %4486 = vmatmul.mubr.f32.vlgmr.msra.gmra.mxu0 %v5878_v39  ;;  %4506 = vmatmul.mubr.f32.gmra.mxu1 %v2854_v30 }
 0x3a2   : > { %4488 = vmatprep.mubr.f32.mxu0 %v2823_v50  ;;  %4508 = vmatprep.mubr.f32.mxu1 %v2864_v23 }
 0x3a3   : > { %4512 = vmatpush3.msra.mxu0 %v5867_v20 }
 0x3a5   : > { %4489 = vmatmul.mubr.f32.gmra.mxu0 %v5893_v3  ;;  %4509 = vmatmul.mubr.f32.gmra.mxu1 %v2874_v57 }
 0x3a6   : > { %4491 = vmatprep.mubr.f32.mxu0 %v2843_v43  ;;  %4527 = vmatprep.mubr.f32.mxu1 %v5880_v40 }
 0x3a9   : > { %4492 = vmatmul.mubr.f32.gmra.mxu0 %v2853_v26  ;;  %4528 = vmatmul.mubr.f32.vlgmr.msra.gmra.mxu1 %v5874_v8 }
 0x3aa   : > { %4494 = vmatprep.mubr.f32.mxu0 %v2863_v34  ;;  %4530 = vmatprep.mubr.f32.mxu1 %v5895_v10 }
 0x3ad   : > { %4495 = vmatmul.mubr.f32.gmra.mxu0 %v2873_v49  ;;  %4531 = vmatmul.mubr.f32.gmra.mxu1 %v5887_v46 }
 0x3ae   : > { %4513 = vmatprep.mubr.f32.mxu0 %v5880_v40  ;;  %4533 = vmatprep.mubr.f32.mxu1 %v5913_v12 }
 0x3b1   : > { %4514 = vmatmul.mubr.f32.vlgmr.msra.gmra.mxu0 %v5874_v8  ;;  %4534 = vmatmul.mubr.f32.gmra.mxu1 %v5905_v36 }
 0x3b2   : > { %4516 = vmatprep.mubr.f32.mxu0 %v5895_v10  ;;  %4536 = vmatprep.mubr.f32.mxu1 %v2862_v47 }
 0x3b5   : > { %4517 = vmatmul.mubr.f32.gmra.mxu0 %v5887_v46  ;;  %4537 = vmatmul.mubr.f32.gmra.mxu1 %v5918_v61 }
 0x3b6   : > { %4519 = vmatprep.mubr.f32.mxu0 %v5913_v12 }
 0x3b9   : > { %4520 = vmatmul.mubr.f32.gmra.mxu0 %v5905_v36 }
 0x3ba   : > { %4522 = vmatprep.mubr.f32.mxu0 %v2862_v47 }
 0x3bd   : > { %4523 = vmatmul.mubr.f32.gmra.mxu0 %v5918_v61 }
 0x449   : > { %v4473_v22 = vpop.f32.mrf.mxu1 }
 0x44b   : > { %v2954_v20 = vpop.f32.mrf.mxu1 }
 0x44d   : > { %v4476_v39 = vpop.f32.mrf.mxu1 }
 0x44f   : > { %v2966_v8 = vpop.f32.mrf.mxu1 }
 0x451   : > { %v4459_v40 = vpop.f32.mrf.mxu0  ;;  %v4479_v17 = vpop.f32.mrf.mxu1 }
 0x452   : > { %v2961_v27 = vadd.f32 %v4473_v22, %v4459_v40 }
 0x453   : > { %v2808_v52 = vpop.f32.mrf.mxu0  ;;  %v2978_v21 = vpop.f32.mrf.mxu1 }
 0x454   : > { %v2955_v14 = vadd.f32 %v2954_v20, %v2808_v52 }
 0x455   : > { %v4462_v48 = vpop.f32.mrf.mxu0  ;;  %v4482_v31 = vpop.f32.mrf.mxu1 }
 0x456   : > { %v2973_v13 = vadd.f32 %v4476_v39, %v4462_v48 }
 0x457   : > { %v2828_v46 = vpop.f32.mrf.mxu0  ;;  %v2990_v62 = vpop.f32.mrf.mxu1 }
 0x458   : > { %v2967_v18 = vadd.f32 %v2966_v8, %v2828_v46 }
 0x459   : > { %v4465_v6 = vpop.f32.mrf.mxu0  ;;  %v4501_v1 = vpop.f32.mrf.mxu1 }
 0x45a   : > { %v2985_v43 = vadd.f32 %v4479_v17, %v4465_v6 }
 0x45b   : > { %v2848_v63 = vpop.f32.mrf.mxu0  ;;  %v3193_v4 = vpop.f32.mrf.mxu1 }
 0x45c   : > { %v2979_v47 = vadd.f32 %v2978_v21, %v2848_v63 }
 0x45d   : > { %v4468_v5 = vpop.f32.mrf.mxu0  ;;  %v4504_v3 = vpop.f32.mrf.mxu1 }
 0x45e   : > { %v2997_v29 = vadd.f32 %v4482_v31, %v4468_v5 }
 0x45f   : > { %v2868_v9 = vpop.f32.mrf.mxu0  ;;  %v3209_v10 = vpop.f32.mrf.mxu1 }
 0x460   : > { %v2991_v45 = vadd.f32 %v2990_v62, %v2868_v9 }
 0x461   : > { %v4487_v11 = vpop.f32.mrf.mxu0  ;;  %v4507_v59 = vpop.f32.mrf.mxu1 }
 0x462   : > { %v3078_v26 = vadd.f32 %v4487_v11, %v2961_v27 }
 0x463   : > { %v3070_v16 = vpop.f32.mrf.mxu0  ;;  %v3225_v42 = vpop.f32.mrf.mxu1 }
 0x464   : > { %v3071_v37 = vadd.f32 %v3070_v16, %v2955_v14  ;;  %v3202_v41 = vadd.f32 %v4501_v1, %v3078_v26 }
 0x465   : > { %v4490_v58 = vpop.f32.mrf.mxu0  ;;  %v4510_v25 = vpop.f32.mrf.mxu1 }
 0x466   : > { %v3092_v2 = vadd.f32 %v4490_v58, %v2973_v13  ;;  %v3194_v49 = vadd.f32 %v3193_v4, %v3071_v37 }
 0x467   : > { %v3084_v50 = vpop.f32.mrf.mxu0  ;;  %v3241_v36 = vpop.f32.mrf.mxu1 }
 0x468   : > { %v3085_v30 = vadd.f32 %v3084_v50, %v2967_v18  ;;  %v3218_v34 = vadd.f32 %v4504_v3, %v3092_v2 }
 0x469   : > { %v4493_v54 = vpop.f32.mrf.mxu0  ;;  %v4529_v28 = vpop.f32.mrf.mxu1 }
 0x46a   : > { %v3106_v44 = vadd.f32 %v4493_v54, %v2985_v43  ;;  %v3210_v7 = vadd.f32 %v3209_v10, %v3085_v30 }
 0x46b   : > { %v3098_v56 = vpop.f32.mrf.mxu0  ;;  %v3437_v53 = vpop.f32.mrf.mxu1 }
 0x46c   : > { %v3099_v57 = vadd.f32 %v3098_v56, %v2979_v47  ;;  %v3234_v39 = vadd.f32 %v4507_v59, %v3106_v44 }
 0x46d   : > { %v4496_v12 = vpop.f32.mrf.mxu0  ;;  %v4532_v0 = vpop.f32.mrf.mxu1 }
 0x46e   : > { %v3120_v22 = vadd.f32 %v4496_v12, %v2997_v29  ;;  %v3226_v46 = vadd.f32 %v3225_v42, %v3099_v57 }
 0x46f   : > { %v3112_v35 = vpop.f32.mrf.mxu0  ;;  %v3449_v61 = vpop.f32.mrf.mxu1 }
 0x470   : > { %v3113_v21 = vadd.f32 %v3112_v35, %v2991_v45  ;;  %v3250_v62 = vadd.f32 %v4510_v25, %v3120_v22 }
 0x471   : > { %v4515_v33 = vpop.f32.mrf.mxu0  ;;  %v4535_v51 = vpop.f32.mrf.mxu1 }
 0x472   : > { %v3330_v32 = vadd.f32 %v4515_v33, %v3202_v41  ;;  %v3242_v58 = vadd.f32 %v3241_v36, %v3113_v21 }
 0x473   : > { %v3323_v19 = vpop.f32.mrf.mxu0  ;;  %v3461_v48 = vpop.f32.mrf.mxu1 }
 0x474   : > { %v3444_v38 = vadd.f32 %v4529_v28, %v3330_v32  ;;  %v3324_v15 = vadd.f32 %v3323_v19, %v3194_v49 }
 0x475   : > { %v4518_v23 = vpop.f32.mrf.mxu0  ;;  %v4538_v59 = vpop.f32.mrf.mxu1 }
 0x476   : > { %v3666_v55 = vadd.f32 -0.6, %v3444_v38  ;;  %v3438_v60 = vadd.f32 %v3437_v53, %v3324_v15  ;;  %v3342_v24 = vadd.f32 %v4518_v23, %v3218_v34 }
 0x477   : > { %v3335_v20 = vpop.f32.mrf.mxu0  ;;  %v3473_v26 = vpop.f32.mrf.mxu1 }
 0x478   : > { %v3492_v8 = vmul.f32 %v3666_v55, %v3666_v55  ;;  %v3665_v40 = vadd.f32 -0.6, %v3438_v60  ;;  %v3456_v17 = vadd.f32 %v4532_v0, %v3342_v24  ;;  %v3336_v52 = vadd.f32 %v3335_v20, %v3210_v7 }
 0x479   : > { %v4521_v31 = vpop.f32.mrf.mxu0 }
 0x47a   : > { %3674 = vst [vmem:[%s5152_s16 + $0xc8] sm:$0xff] %v3492_v8  ;;  %v3491_v6 = vmul.f32 %v3665_v40, %v3665_v40  ;;  %v3668_v1 = vadd.f32 -0.6, %v3456_v17  ;;  %v3450_v63 = vadd.f32 %v3449_v61, %v3336_v52  ;;  %v3354_v4 = vadd.f32 %v4521_v31, %v3234_v39 }
 0x47b   : > { %v3347_v5 = vpop.f32.mrf.mxu0 }
 0x47c   : > { %3673 = vst [vmem:[%s5152_s16 + $0xc0] sm:$0xff] %v3491_v6  ;;  %v3494_v3 = vmul.f32 %v3668_v1, %v3668_v1  ;;  %v3667_v9 = vadd.f32 -0.6, %v3450_v63  ;;  %v3468_v10 = vadd.f32 %v4535_v51, %v3354_v4  ;;  %v3348_v11 = vadd.f32 %v3347_v5, %v3226_v46 }
 0x47d   : > { %v4524_v16 = vpop.f32.mrf.mxu0 }
 0x47e   : > { %3676 = vst [vmem:[%s5152_s16 + $0xd8] sm:$0xff] %v3494_v3  ;;  %v3493_v42 = vmul.f32 %v3667_v9, %v3667_v9  ;;  %v3670_v50 = vadd.f32 -0.6, %v3468_v10  ;;  %v3462_v54 = vadd.f32 %v3461_v48, %v3348_v11  ;;  %v3366_v28 = vadd.f32 %v4524_v16, %v3250_v62 }
 0x47f   : > { %v3359_v27 = vpop.f32.mrf.mxu0 }
 0x480   : > { %3675 = vst [vmem:[%s5152_s16 + $0xd0] sm:$0xff] %v3493_v42  ;;  %v3496_v25 = vmul.f32 %v3670_v50, %v3670_v50  ;;  %v3669_v56 = vadd.f32 -0.6, %v3462_v54  ;;  %v3480_v53 = vadd.f32 %v4538_v59, %v3366_v28  ;;  %v3360_v14 = vadd.f32 %v3359_v27, %v3242_v58 }
 0x482   : > { %3678 = vst [vmem:[%s5152_s16 + $0xe8] sm:$0xff] %v3496_v25  ;;  %v3495_v36 = vmul.f32 %v3669_v56, %v3669_v56  ;;  %v3672_v12 = vadd.f32 -0.6, %v3480_v53  ;;  %v3474_v0 = vadd.f32 %v3473_v26, %v3360_v14 }
 0x484   : > { %3677 = vst [vmem:[%s5152_s16 + $0xe0] sm:$0xff] %v3495_v36  ;;  %v3498_v13 = vmul.f32 %v3672_v12, %v3672_v12  ;;  %v3671_v37 = vadd.f32 -0.6, %v3474_v0 }
 0x486   : > { %3680 = vst [vmem:[%s5152_s16 + $0xf8] sm:$0xff] %v3498_v13  ;;  %v3497_v35 = vmul.f32 %v3671_v37, %v3671_v37 }
 0x488   : > { %3679 = vst [vmem:[%s5152_s16 + $0xf0] sm:$0xff] %v3497_v35 }
 0x489   : > { %4677 = shalt.err (!%p4674_p13)
}
 0x48a   : > { %s4678_s16 = scalar_lea.hbm %s5959_s26, 4096  ;;  %s4682_s15 = scalar_lea.hbm %s6017_s6, 8192 }
 0x48b   : > { %p4679_p4 = scmp.ne.s32.totalorder %s5959_s26, %s4678_s16  ;;  %p4683_p11 = scmp.lt.s32.totalorder %s5959_s26, %s6017_s6 }
 0x48c   : > { %p4684_p5 = scmp.lt.s32.totalorder %s4682_s15, %s4678_s16 }
 0x48d   : > { %p4680_p6 = pnand %p4679_p4, %p6102_p7 }
 0x48e   : > { %p4685_p0 = por %p4684_p5, %p4683_p11 }
 0x48f   : > { %p4681_p10 = pneg %p4680_p6 }
 0x491   : > { %p4686_p3 = pnand %p4685_p0, %p4681_p10 }
 0x493   : > { %4689 = shalt.err (!%p4686_p3)
}
 0x494   : > { %s4757_s13 = smov 128   ;;  %s4758_s18 = smov 8  }
 0x495   : > { %4548 = dma.vmem_to_hbm [thread:$0]  (%p6102_p7), %s5961_s8, 4096, %s5959_s26, %s3509_s11, %s4757_s13, %s4757_s13, %s4758_s18  }
 0x496 PF: > { %s6103_s27 = sld [smem:[#allocation11_spill]] }
 0x497   : > { %s6104_s7 = sld [smem:[#allocation13_spill]] }
 0x498   : > { %s6105_s28 = sld [smem:[#allocation12_spill]] }
 0x49c   : > { %s3539_s12 = sand.u32 1, %s6103_s27  }
 0x49d   : > { %p6106_p12 = scmp.ne.s32.totalorder %s6104_s7, 0  ;;  %s3540_s24 = scalar_lea.sflag [#allocation4], %s3539_s12 }
 0x49e   : > { %p6107_p2 = scmp.ge.s32.totalorder %s6105_s28, 2 }
 0x4a0   : > { %p4559_p1 = pnand %p6107_p2, %p6106_p12 }
 0x4a2   : > { %p4560_p9 = pneg %p4559_p1 }
 0x4a4   : > { %4723 = dma.done.wait (%p4560_p9), %s3540_s24, 4096  }
 0x4a5   : > { %4725 = vsyncadd (%p4560_p9), %s3540_s24, 4294963200  ;;  %s23_s26 = sadd.s32 1, %s6105_s28   ;;  %s6108_s21 = smov %s4732_s22 }
 0x4a6   : > { %p20_p8 = scmp.ge.s32.totalorder %s23_s26, 4   ;;  %s6109_s22 = smov %s4736_s23 }
 0x4a7   : > { %s6110_s23 = smov %s4902_s10  ;;  %s6111_s24 = smov %s4744_s25 }
 0x4a8   : > { %s6112_s25 = smov %s6114_s17  ;;  %22 = sbr.rel (!%p20_p8) target bundleno = 9 (0x9), region = 99 }
 0x4ad   :  { %3545 = vsyncpa [#allocation3], 1 }
 0x4ae   :  { %3547 = vsyncpa [#allocation3 + $0x1], 1 }
 0x4af   :  { %3548 = vsyncpa [#allocation4], 1 }
 0x4b0   :  { %3550 = vsyncpa [#allocation4 + $0x1], 1 }
 0x4b1   :  { %3551 = vsyncpa [#allocation5], 1 }
 0x4b2   :  { %3553 = vsyncpa [#allocation5 + $0x1], 1 }

</bundles_post_ra>
